<compile_context>
chip_gen: v7x
topology: tpu7x:2x2x1
jax: 0.10.0
libtpu: 0.0.40
codegen_flags: <defaults>
</compile_context>

<pallas_src>
import math

import numpy as np
import jax
import jax.numpy as jnp
from jax.experimental import pallas as pl
from jax.experimental.pallas import tpu as pltpu

_SQRT_2_OVER_PI = math.sqrt(2.0 / math.pi)


def gelu(x):
    # TODO(synk): torch.nn.GELU() defaults to the exact erf form; the tanh approximation
    # is used so the elementwise op lowers cleanly in Mosaic.
    return 0.5 * x * (1.0 + jnp.tanh(_SQRT_2_OVER_PI * (x + 0.044715 * x * x * x)))


def layer_norm(x, gamma, beta, eps=1e-5):
    mu = jnp.mean(x, axis=-1, keepdims=True)
    var = jnp.mean((x - mu) ** 2, axis=-1, keepdims=True)
    return (x - mu) * jax.lax.rsqrt(var + eps) * gamma + beta


# ----------------------------------------------------------------------------
# Fused Pallas kernel (one grid step == one batch item):
#   encoder layer + mean pooling + both SliceMLP heads
# ----------------------------------------------------------------------------
def fused_forward_kernel(
        x_ref, bias_ref, wvar_ref, wstmt_ref,
        wqkv, bqkv, wo, bo, ln1_g, ln1_b, w1, b1, w2, b2, ln2_g, ln2_b,
        w1s, w1v, b1h, w2bd, b2h, w3s, b3s,
        o_ref):
    T, H = x_ref.shape[1], x_ref.shape[2]
    S = wstmt_ref.shape[1]
    bf16, f32 = jnp.bfloat16, jnp.float32

    xb = x_ref[0]                                   # (T, H) bf16
    x = xb.astype(f32)                              # residual / layernorm path stays f32

    # ---- single-head self-attention; fused QKV projection (T,H)@(H,3H) ----
    # 1/sqrt(H) is folded into the Q columns of wqkv / bqkv on the host.
    qkv = jnp.dot(xb, wqkv[...], preferred_element_type=f32) + bqkv[...]
    q = qkv[:, 0:H]
    k = qkv[:, H:2 * H]
    v = qkv[:, 2 * H:3 * H]
    s = jax.lax.dot_general(q.astype(bf16), k.astype(bf16),
                            (((1,), (1,)), ((), ())),
                            preferred_element_type=f32)           # (T, T)
    s = s + bias_ref[0]                             # additive attention mask (1, T)
    s = s - jnp.max(s, axis=-1, keepdims=True)
    e = jnp.exp(s)
    p = e * pl.reciprocal(jnp.sum(e, axis=-1, keepdims=True), approx=True)
    ctx = jnp.dot(p.astype(bf16), v.astype(bf16), preferred_element_type=f32)  # (T, H)
    attn = jnp.dot(ctx.astype(bf16), wo[...], preferred_element_type=f32) + bo[...]
    h1 = layer_norm(x + attn, ln1_g[...], ln1_b[...])

    # ---- feed-forward ----
    ff = gelu(jnp.dot(h1.astype(bf16), w1[...], preferred_element_type=f32) + b1[...])
    ff = jnp.dot(ff.astype(bf16), w2[...], preferred_element_type=f32) + b2[...]
    h = layer_norm(h1 + ff, ln2_g[...], ln2_b[...])               # (T, H) f32

    # ---- mean pooling (variable tokens / per-statement tokens) as bf16 matmuls ----
    hb = h.astype(bf16)
    var = jnp.dot(wvar_ref[0], hb, preferred_element_type=f32)    # (1, H)
    stmt = jnp.dot(wstmt_ref[0], hb, preferred_element_type=f32)  # (S, H)

    # ---- both SliceMLP heads in one pass ----
    # fc1 split into stmt/var halves (concat(stmt_emb, var_emb) never materialized),
    # heads stacked along the output dim: columns [0:H) = back head, [H:2H) = forward.
    zs = jnp.dot(stmt.astype(bf16), w1s[...], preferred_element_type=f32)   # (S, 2H)
    zv = jnp.dot(var.astype(bf16), w1v[...], preferred_element_type=f32)    # (1, 2H)
    z = gelu(zs + zv + b1h[...])
    # dropout: identity in eval mode
    # fc2 as block-diagonal (2H, 2H) so the two heads stay independent but run as one
    # full-width MXU pass.
    z = gelu(jnp.dot(z.astype(bf16), w2bd[...], preferred_element_type=f32) + b2h[...])
    # fc3 for both heads as a single stacked cross-lane reduce (XLU work, overlaps MXU).
    z2 = z.reshape(S, 2, H)
    logits = jnp.sum(z2 * w3s[...][None, :, :], axis=-1)          # (S, 2)
    o_ref[0] = logits + b3s[...]                                  # (S, 2): [:,0]=back, [:,1]=fwd


# ----------------------------------------------------------------------------
# Weight packing (host-side, once per forward)
# ----------------------------------------------------------------------------
def _pack_encoder_args(enc, H):
    scale = 1.0 / math.sqrt(H)
    bf = lambda a: a.astype(jnp.bfloat16)
    wqkv = jnp.concatenate([enc['wq'] * scale, enc['wk'], enc['wv']], axis=1)   # (H, 3H)
    bqkv = jnp.concatenate([enc['bq'] * scale, enc['bk'], enc['bv']], axis=1)   # (1, 3H)
    return [bf(wqkv), bqkv, bf(enc['wo']), enc['bo'],
            enc['ln1_g'], enc['ln1_b'],
            bf(enc['w1']), enc['b1'], bf(enc['w2']), enc['b2'],
            enc['ln2_g'], enc['ln2_b']]


def _pack_head_args(back, fwd, H):
    bf = lambda a: a.astype(jnp.bfloat16)
    w1s = jnp.concatenate([back['w1'][:H], fwd['w1'][:H]], axis=1)              # (H, 2H)
    w1v = jnp.concatenate([back['w1'][H:], fwd['w1'][H:]], axis=1)              # (H, 2H)
    b1h = jnp.concatenate([back['b1'], fwd['b1']], axis=1)                      # (1, 2H)
    zero = jnp.zeros((H, H), back['w2'].dtype)
    w2bd = jnp.concatenate(
        [jnp.concatenate([back['w2'], zero], axis=1),
         jnp.concatenate([zero, fwd['w2']], axis=1)], axis=0)                   # (2H, 2H)
    b2h = jnp.concatenate([back['b2'], fwd['b2']], axis=1)                      # (1, 2H)
    w3s = jnp.concatenate([back['w3'].T, fwd['w3'].T], axis=0)                  # (2, H)
    b3s = jnp.concatenate([back['b3'], fwd['b3']], axis=1)                      # (1, 2)
    return [bf(w1s), bf(w1v), b1h, bf(w2bd), b2h, w3s, b3s]


# ----------------------------------------------------------------------------
# Wrapper: grid over the batch axis (parallel -> both v7x TensorCores)
# ----------------------------------------------------------------------------
def fused_forward(x_bf16, attn_bias, w_var, w_stmt, params):
    B, T, H = x_bf16.shape
    S = w_stmt.shape[1]
    kargs = (_pack_encoder_args(params['enc'], H)
             + _pack_head_args(params['back_mlp'], params['forward_mlp'], H))

    def const_spec(arr):
        nd = arr.ndim
        return pl.BlockSpec(arr.shape, lambda b, _nd=nd: (0,) * _nd)   # resident weights

    in_specs = [
        pl.BlockSpec((1, T, H), lambda b: (b, 0, 0)),      # x          (bf16)
        pl.BlockSpec((1, 1, T), lambda b: (b, 0, 0)),      # attn bias  (f32)
        pl.BlockSpec((1, 1, T), lambda b: (b, 0, 0)),      # W_var      (bf16)
        pl.BlockSpec((1, S, T), lambda b: (b, 0, 0)),      # W_stmt     (bf16)
    ] + [const_spec(a) for a in kargs]

    return pl.pallas_call(
        fused_forward_kernel,
        out_shape=jax.ShapeDtypeStruct((B, S, 2), jnp.float32),
        grid_spec=pltpu.PrefetchScalarGridSpec(
            num_scalar_prefetch=0,
            grid=(B,),
            in_specs=in_specs,
            out_specs=pl.BlockSpec((1, S, 2), lambda b: (b, 0, 0)),
        ),
        compiler_params=pltpu.CompilerParams(
            dimension_semantics=("parallel",),
            # keep headroom below v7x's 64 MiB physical VMEM
            vmem_limit_bytes=48 * 1024 * 1024,
        ),
    )(x_bf16, attn_bias, w_var, w_stmt, *kargs)


# ----------------------------------------------------------------------------
# Host-side glue (ragged bookkeeping, mirrors the PyTorch loop verbatim)
# ----------------------------------------------------------------------------
def build_pool_weights(statements_np, variables_np, max_tokens, T, sublane_pad=16):
    """Pure-numpy construction of the mean-pooling weight matrices.

    Statement rows are COMPACTED exactly like the PyTorch loop (empty statement ids are
    skipped), so variables_line_numbers index the same compacted list on both paths.
    S is padded only to the sublane granule (16 for bf16 pooling weights)."""
    B = statements_np.shape[0]
    stmt_rows, n_statements = [], []
    for b in range(B):
        item = statements_np[b][statements_np[b] != max_tokens - 1]
        n_ids = int(item.max()) + 1 if item.size else 0
        rows = []
        for s in range(n_ids):
            # indices into the *filtered* statement-id array, used directly as token
            # indices into the hidden states (matches the PyTorch code verbatim).
            idx = np.nonzero(item == s)[0]
            if len(idx) == 0:
                continue                      # PyTorch skips empty statements
            rows.append(idx)
        stmt_rows.append(rows)
        n_statements.append(len(rows))

    S_pad = max(max(n_statements), 1)
    S_pad = ((S_pad + sublane_pad - 1) // sublane_pad) * sublane_pad

    W_var = np.zeros((B, 1, T), np.float32)
    W_stmt = np.zeros((B, S_pad, T), np.float32)
    for b in range(B):
        vids = variables_np[b]
        vids = vids[vids != -1]
        # TODO(synk): if a batch item has no valid variable ids, the variable embedding
        #             silently becomes zero (PyTorch would produce NaN from an empty mean).
        for t in vids:                        # mean over (possibly repeated) variable tokens
            W_var[b, 0, int(t)] += 1.0 / max(len(vids), 1)
        for r, idx in enumerate(stmt_rows[b]):
            W_stmt[b, r, idx] = 1.0 / len(idx)
    return W_var, W_stmt, n_statements, S_pad


def auto_slicing_forward(params, inputs_ids, inputs_masks, statements_np,
                         variables_np, variables_line_numbers, max_tokens):
    B, T = inputs_ids.shape

    # Pooling weights built from host data up front (no device->host sync mid-pipeline).
    W_var, W_stmt, n_statements, _ = build_pool_weights(
        statements_np, variables_np, max_tokens, T)

    # word + statement embeddings (use_statement_ids=True): gather glue outside the kernel.
    # Hidden states fed to the kernel as bf16 (halves the largest activation DMA).
    x = (params['word_emb'][inputs_ids]
         + params['stmt_emb'][jnp.asarray(statements_np)]).astype(jnp.bfloat16)
    attn_bias = ((inputs_masks.astype(jnp.float32) - 1.0) * 1e9).reshape(B, 1, T)

    out = fused_forward(x, attn_bias,
                        jnp.asarray(W_var, dtype=jnp.bfloat16),
                        jnp.asarray(W_stmt, dtype=jnp.bfloat16),
                        params)
    # out[b, s, 0] = back-head logit for compacted statement s, out[b, s, 1] = forward.

    batch_preds = {'back': [], 'forward': []}
    for b in range(B):
        line = int(variables_line_numbers[b])
        n = n_statements[b]
        batch_preds['back'].append(out[b, :line, 0])
        batch_preds['forward'].append(out[b, line + 1:n, 1])
    return batch_preds


# ----------------------------------------------------------------------------
# Pure-JAX reference (direct translation of the PyTorch loop) for verification
# ----------------------------------------------------------------------------
def reference_forward(params, inputs_ids, inputs_masks, statements_np,
                      variables_np, variables_line_numbers, max_tokens):
    p = params['enc']
    x = params['word_emb'][inputs_ids] + params['stmt_emb'][jnp.asarray(statements_np)]
    mask = inputs_masks.astype(jnp.float32)
    scale = 1.0 / math.sqrt(x.shape[-1])
    q = x @ p['wq'] + p['bq']
    k = x @ p['wk'] + p['bk']
    v = x @ p['wv'] + p['bv']
    s = jnp.einsum('bqh,bkh->bqk', q, k) * scale + (mask[:, None, :] - 1.0) * 1e9
    s = s - s.max(axis=-1, keepdims=True)
    a = jnp.exp(s)
    a = a / a.sum(axis=-1, keepdims=True)
    ctx = jnp.einsum('bqk,bkh->bqh', a, v)
    attn = ctx @ p['wo'] + p['bo']
    h1 = layer_norm(x + attn, p['ln1_g'], p['ln1_b'])
    ff = gelu(h1 @ p['w1'] + p['b1']) @ p['w2'] + p['b2']
    h = layer_norm(h1 + ff, p['ln2_g'], p['ln2_b'])

    def mlp(Xi, m):
        z = gelu(Xi @ m['w1'] + m['b1'])
        z = gelu(z @ m['w2'] + m['b2'])
        return (z @ m['w3'] + m['b3'])[..., 0]

    batch_preds = {'back': [], 'forward': []}
    for b in range(h.shape[0]):
        E = h[b]
        vids = variables_np[b]
        vids = vids[vids != -1]
        var_emb = jnp.mean(E[vids], axis=0)
        item_sids = statements_np[b][statements_np[b] != max_tokens - 1]
        stmt_embs = []
        for sid in range(int(item_sids.max()) + 1):
            idx = np.nonzero(item_sids == sid)[0]
            if len(idx) == 0:
                continue
            stmt_embs.append(jnp.mean(E[idx], axis=0))
        line = int(variables_line_numbers[b])
        back = stmt_embs[:line]
        fwd = stmt_embs[line + 1:]
        empty = jnp.zeros((0,), jnp.float32)
        if back:
            Xb = jnp.stack([jnp.concatenate([e, var_emb]) for e in back])
            batch_preds['back'].append(mlp(Xb, params['back_mlp']))
        else:
            batch_preds['back'].append(empty)
        if fwd:
            Xf = jnp.stack([jnp.concatenate([e, var_emb]) for e in fwd])
            batch_preds['forward'].append(mlp(Xf, params['forward_mlp']))
        else:
            batch_preds['forward'].append(empty)
    return batch_preds


# ----------------------------------------------------------------------------
# Deterministic parameter init
# ----------------------------------------------------------------------------
def init_params(key, H, vocab, max_tokens):
    F = 4 * H
    keys = iter(jax.random.split(key, 64))

    def w(shape, scale=0.05):
        return (scale * jax.random.normal(next(keys), shape)).astype(jnp.float32)

    enc = dict(
        wq=w((H, H)), bq=w((1, H)), wk=w((H, H)), bk=w((1, H)),
        wv=w((H, H)), bv=w((1, H)), wo=w((H, H)), bo=w((1, H)),
        ln1_g=jnp.ones((1, H), jnp.float32), ln1_b=jnp.zeros((1, H), jnp.float32),
        w1=w((H, F)), b1=w((1, F)), w2=w((F, H)), b2=w((1, H)),
        ln2_g=jnp.ones((1, H), jnp.float32), ln2_b=jnp.zeros((1, H), jnp.float32),
    )

    def slice_mlp_params():
        return dict(w1=w((2 * H, H)), b1=w((1, H)),
                    w2=w((H, H)), b2=w((1, H)),
                    w3=w((H, 1)), b3=w((1, 1)))

    return dict(word_emb=w((vocab, H), 0.1),
                stmt_emb=w((max_tokens, H), 0.1),
                enc=enc,
                back_mlp=slice_mlp_params(),
                forward_mlp=slice_mlp_params())


# ----------------------------------------------------------------------------
if __name__ == "__main__":
    B, T, H, VOCAB = 2, 16, 128, 64
    MAX_TOKENS = 8                     # statement-id vocabulary; padding id = MAX_TOKENS - 1

    key = jax.random.PRNGKey(0)
    k_param, k_ids = jax.random.split(key)
    params = init_params(k_param, H, VOCAB, MAX_TOKENS)

    inputs_ids = jax.random.randint(k_ids, (B, T), 0, VOCAB, dtype=jnp.int32)
    statements_np = np.full((B, T), MAX_TOKENS - 1, np.int32)
    # item 0: statement ids 0..3 (4 statements)
    statements_np[0, :12] = np.repeat(np.arange(4, dtype=np.int32), 3)
    # item 1: statement ids {0,1,3,4,5} -> id 2 is absent, exercising the PyTorch
    # "skip empty statement" compaction on both the kernel and reference paths.
    statements_np[1, :15] = np.repeat(np.array([0, 1, 3, 4, 5], np.int32), 3)
    inputs_masks = jnp.asarray((statements_np != MAX_TOKENS - 1).astype(np.float32))
    variables_np = np.array([[3, 4, -1, -1],
                             [6, 7, 8, -1]], np.int32)
    variables_line_numbers = np.array([1, 2], np.int32)

    preds = auto_slicing_forward(params, inputs_ids, inputs_masks, statements_np,
                                 variables_np, variables_line_numbers, MAX_TOKENS)
    for leaf in preds['back'] + preds['forward']:
        jax.block_until_ready(leaf)

    ref = reference_forward(params, inputs_ids, inputs_masks, statements_np,
                            variables_np, variables_line_numbers, MAX_TOKENS)
    for side in ('back', 'forward'):
        for got, want in zip(preds[side], ref[side]):
            np.testing.assert_allclose(np.asarray(got), np.asarray(want),
                                       rtol=5e-2, atol=5e-2)

    print("KERNEL_OK")
</pallas_src>

<mosaic_0001>
module attributes {stable_mosaic.version = 11 : i64} {
  func.func @fused_forward_kernel(%arg0: i32, %arg1: memref<1x16x128xbf16, #tpu.memory_space<vmem>>, %arg2: memref<1x1x16xf32, #tpu.memory_space<vmem>>, %arg3: memref<1x1x16xbf16, #tpu.memory_space<vmem>>, %arg4: memref<1x16x16xbf16, #tpu.memory_space<vmem>>, %arg5: memref<128x384xbf16, #tpu.memory_space<vmem>>, %arg6: memref<1x384xf32, #tpu.memory_space<vmem>>, %arg7: memref<128x128xbf16, #tpu.memory_space<vmem>>, %arg8: memref<1x128xf32, #tpu.memory_space<vmem>>, %arg9: memref<1x128xf32, #tpu.memory_space<vmem>>, %arg10: memref<1x128xf32, #tpu.memory_space<vmem>>, %arg11: memref<128x512xbf16, #tpu.memory_space<vmem>>, %arg12: memref<1x512xf32, #tpu.memory_space<vmem>>, %arg13: memref<512x128xbf16, #tpu.memory_space<vmem>>, %arg14: memref<1x128xf32, #tpu.memory_space<vmem>>, %arg15: memref<1x128xf32, #tpu.memory_space<vmem>>, %arg16: memref<1x128xf32, #tpu.memory_space<vmem>>, %arg17: memref<128x256xbf16, #tpu.memory_space<vmem>>, %arg18: memref<128x256xbf16, #tpu.memory_space<vmem>>, %arg19: memref<1x256xf32, #tpu.memory_space<vmem>>, %arg20: memref<256x256xbf16, #tpu.memory_space<vmem>>, %arg21: memref<1x256xf32, #tpu.memory_space<vmem>>, %arg22: memref<2x128xf32, #tpu.memory_space<vmem>>, %arg23: memref<1x2xf32, #tpu.memory_space<vmem>>, %arg24: memref<1x16x2xf32, #tpu.memory_space<vmem>>) attributes {dimension_semantics = [#tpu.dimension_semantics<parallel>], iteration_bounds = array<i64: 2>, scalar_prefetch = 0 : i64, scratch_operands = 0 : i64, tpu.core_type = #tpu.core_type<tc>, window_params = [{transform_indices = @transform_0, window_bounds = array<i64: 1, 16, 128>}, {transform_indices = @transform_1, window_bounds = array<i64: 1, 1, 16>}, {transform_indices = @transform_2, window_bounds = array<i64: 1, 1, 16>}, {transform_indices = @transform_3, window_bounds = array<i64: 1, 16, 16>}, {pipeline_mode = #tpu.pipeline_mode<synchronous>, transform_indices = @transform_4, window_bounds = array<i64: 128, 384>}, {pipeline_mode = #tpu.pipeline_mode<synchronous>, transform_indices = @transform_5, window_bounds = array<i64: 1, 384>}, {pipeline_mode = #tpu.pipeline_mode<synchronous>, transform_indices = @transform_6, window_bounds = array<i64: 128, 128>}, {pipeline_mode = #tpu.pipeline_mode<synchronous>, transform_indices = @transform_7, window_bounds = array<i64: 1, 128>}, {pipeline_mode = #tpu.pipeline_mode<synchronous>, transform_indices = @transform_8, window_bounds = array<i64: 1, 128>}, {pipeline_mode = #tpu.pipeline_mode<synchronous>, transform_indices = @transform_9, window_bounds = array<i64: 1, 128>}, {pipeline_mode = #tpu.pipeline_mode<synchronous>, transform_indices = @transform_10, window_bounds = array<i64: 128, 512>}, {pipeline_mode = #tpu.pipeline_mode<synchronous>, transform_indices = @transform_11, window_bounds = array<i64: 1, 512>}, {pipeline_mode = #tpu.pipeline_mode<synchronous>, transform_indices = @transform_12, window_bounds = array<i64: 512, 128>}, {pipeline_mode = #tpu.pipeline_mode<synchronous>, transform_indices = @transform_13, window_bounds = array<i64: 1, 128>}, {pipeline_mode = #tpu.pipeline_mode<synchronous>, transform_indices = @transform_14, window_bounds = array<i64: 1, 128>}, {pipeline_mode = #tpu.pipeline_mode<synchronous>, transform_indices = @transform_15, window_bounds = array<i64: 1, 128>}, {pipeline_mode = #tpu.pipeline_mode<synchronous>, transform_indices = @transform_16, window_bounds = array<i64: 128, 256>}, {pipeline_mode = #tpu.pipeline_mode<synchronous>, transform_indices = @transform_17, window_bounds = array<i64: 128, 256>}, {pipeline_mode = #tpu.pipeline_mode<synchronous>, transform_indices = @transform_18, window_bounds = array<i64: 1, 256>}, {pipeline_mode = #tpu.pipeline_mode<synchronous>, transform_indices = @transform_19, window_bounds = array<i64: 256, 256>}, {pipeline_mode = #tpu.pipeline_mode<synchronous>, transform_indices = @transform_20, window_bounds = array<i64: 1, 256>}, {pipeline_mode = #tpu.pipeline_mode<synchronous>, transform_indices = @transform_21, window_bounds = array<i64: 2, 128>}, {pipeline_mode = #tpu.pipeline_mode<synchronous>, transform_indices = @transform_22, window_bounds = array<i64: 1, 2>}, {transform_indices = @transform_23, window_bounds = array<i64: 1, 16, 2>}]} {
    %c0 = arith.constant 0 : index
    %c0_0 = arith.constant 0 : index
    %c0_1 = arith.constant 0 : index
    %0 = vector.load %arg1[%c0, %c0_0, %c0_1] : memref<1x16x128xbf16, #tpu.memory_space<vmem>>, vector<1x16x128xbf16>
    %1 = vector.shape_cast %0 : vector<1x16x128xbf16> to vector<16x128xbf16>
    %2 = arith.extf %1 : vector<16x128xbf16> to vector<16x128xf32>
    %c0_2 = arith.constant 0 : index
    %c0_3 = arith.constant 0 : index
    %3 = vector.load %arg5[%c0_2, %c0_3] : memref<128x384xbf16, #tpu.memory_space<vmem>>, vector<128x384xbf16>
    %cst = arith.constant dense<0.000000e+00> : vector<16x384xf32>
    %4 = tpu.matmul %1, %3, %cst {dimension_numbers = #tpu.dot_dimension_numbers<[1], [0], [0], [1], [0, 0, 1, 1], [], []>} : vector<16x128xbf16>, vector<128x384xbf16>, vector<16x384xf32> -> vector<16x384xf32>
    %c0_4 = arith.constant 0 : index
    %c0_5 = arith.constant 0 : index
    %5 = vector.load %arg6[%c0_4, %c0_5] : memref<1x384xf32, #tpu.memory_space<vmem>>, vector<1x384xf32>
    %6 = vector.broadcast %5 : vector<1x384xf32> to vector<16x384xf32>
    %7 = arith.addf %4, %6 : vector<16x384xf32>
    %8 = vector.extract_strided_slice %7 {offsets = [0, 0], sizes = [16, 128], strides = [1, 1]} : vector<16x384xf32> to vector<16x128xf32>
    %9 = vector.extract_strided_slice %7 {offsets = [0, 128], sizes = [16, 128], strides = [1, 1]} : vector<16x384xf32> to vector<16x128xf32>
    %10 = vector.extract_strided_slice %7 {offsets = [0, 256], sizes = [16, 128], strides = [1, 1]} : vector<16x384xf32> to vector<16x128xf32>
    %11 = arith.truncf %8 : vector<16x128xf32> to vector<16x128xbf16>
    %12 = arith.truncf %9 : vector<16x128xf32> to vector<16x128xbf16>
    %cst_6 = arith.constant dense<0.000000e+00> : vector<16x16xf32>
    %13 = tpu.matmul %11, %12, %cst_6 {dimension_numbers = #tpu.dot_dimension_numbers<[1], [1], [0], [0], [0, 0, 1, 0], [], []>} : vector<16x128xbf16>, vector<16x128xbf16>, vector<16x16xf32> -> vector<16x16xf32>
    %c0_7 = arith.constant 0 : index
    %c0_8 = arith.constant 0 : index
    %c0_9 = arith.constant 0 : index
    %14 = vector.load %arg2[%c0_7, %c0_8, %c0_9] : memref<1x1x16xf32, #tpu.memory_space<vmem>>, vector<1x1x16xf32>
    %15 = vector.shape_cast %14 : vector<1x1x16xf32> to vector<1x16xf32>
    %16 = vector.broadcast %15 : vector<1x16xf32> to vector<16x16xf32>
    %17 = arith.addf %13, %16 : vector<16x16xf32>
    %cst_10 = arith.constant dense<0xFF800000> : vector<16xf32>
    %18 = vector.multi_reduction <maximumf>, %17, %cst_10 [1] : vector<16x16xf32> to vector<16xf32>
    %19 = vector.shape_cast %18 : vector<16xf32> to vector<16x1xf32>
    %20 = vector.broadcast %19 : vector<16x1xf32> to vector<16x16xf32>
    %21 = arith.subf %17, %20 : vector<16x16xf32>
    %22 = math.exp %21 : vector<16x16xf32>
    %cst_11 = arith.constant dense<0.000000e+00> : vector<16xf32>
    %23 = vector.multi_reduction <add>, %22, %cst_11 [1] : vector<16x16xf32> to vector<16xf32>
    %24 = vector.shape_cast %23 : vector<16xf32> to vector<16x1xf32>
    %25 = tpu.reciprocal %24 {approx = true} : vector<16x1xf32> -> vector<16x1xf32>
    %26 = vector.broadcast %25 : vector<16x1xf32> to vector<16x16xf32>
    %27 = arith.mulf %22, %26 : vector<16x16xf32>
    %28 = arith.truncf %27 : vector<16x16xf32> to vector<16x16xbf16>
    %29 = arith.truncf %10 : vector<16x128xf32> to vector<16x128xbf16>
    %cst_12 = arith.constant dense<0.000000e+00> : vector<16x128xf32>
    %30 = tpu.matmul %28, %29, %cst_12 {dimension_numbers = #tpu.dot_dimension_numbers<[1], [0], [0], [1], [0, 0, 1, 1], [], []>} : vector<16x16xbf16>, vector<16x128xbf16>, vector<16x128xf32> -> vector<16x128xf32>
    %31 = arith.truncf %30 : vector<16x128xf32> to vector<16x128xbf16>
    %c0_13 = arith.constant 0 : index
    %c0_14 = arith.constant 0 : index
    %32 = vector.load %arg7[%c0_13, %c0_14] : memref<128x128xbf16, #tpu.memory_space<vmem>>, vector<128x128xbf16>
    %cst_15 = arith.constant dense<0.000000e+00> : vector<16x128xf32>
    %33 = tpu.matmul %31, %32, %cst_15 {dimension_numbers = #tpu.dot_dimension_numbers<[1], [0], [0], [1], [0, 0, 1, 1], [], []>} : vector<16x128xbf16>, vector<128x128xbf16>, vector<16x128xf32> -> vector<16x128xf32>
    %c0_16 = arith.constant 0 : index
    %c0_17 = arith.constant 0 : index
    %34 = vector.load %arg8[%c0_16, %c0_17] : memref<1x128xf32, #tpu.memory_space<vmem>>, vector<1x128xf32>
    %35 = vector.broadcast %34 : vector<1x128xf32> to vector<16x128xf32>
    %36 = arith.addf %33, %35 : vector<16x128xf32>
    %37 = arith.addf %2, %36 : vector<16x128xf32>
    %c0_18 = arith.constant 0 : index
    %c0_19 = arith.constant 0 : index
    %38 = vector.load %arg9[%c0_18, %c0_19] : memref<1x128xf32, #tpu.memory_space<vmem>>, vector<1x128xf32>
    %c0_20 = arith.constant 0 : index
    %c0_21 = arith.constant 0 : index
    %39 = vector.load %arg10[%c0_20, %c0_21] : memref<1x128xf32, #tpu.memory_space<vmem>>, vector<1x128xf32>
    %cst_22 = arith.constant dense<0.000000e+00> : vector<16xf32>
    %40 = vector.multi_reduction <add>, %37, %cst_22 [1] : vector<16x128xf32> to vector<16xf32>
    %41 = vector.shape_cast %40 : vector<16xf32> to vector<16x1xf32>
    %cst_23 = arith.constant 1.280000e+02 : f32
    %42 = vector.broadcast %cst_23 : f32 to vector<16x1xf32>
    %43 = arith.divf %41, %42 : vector<16x1xf32>
    %44 = vector.broadcast %43 : vector<16x1xf32> to vector<16x128xf32>
    %45 = arith.subf %37, %44 : vector<16x128xf32>
    %46 = arith.mulf %45, %45 : vector<16x128xf32>
    %cst_24 = arith.constant dense<0.000000e+00> : vector<16xf32>
    %47 = vector.multi_reduction <add>, %46, %cst_24 [1] : vector<16x128xf32> to vector<16xf32>
    %48 = vector.shape_cast %47 : vector<16xf32> to vector<16x1xf32>
    %cst_25 = arith.constant 1.280000e+02 : f32
    %49 = vector.broadcast %cst_25 : f32 to vector<16x1xf32>
    %50 = arith.divf %48, %49 : vector<16x1xf32>
    %51 = vector.broadcast %43 : vector<16x1xf32> to vector<16x128xf32>
    %52 = arith.subf %37, %51 : vector<16x128xf32>
    %cst_26 = arith.constant 9.99999974E-6 : f32
    %53 = vector.broadcast %cst_26 : f32 to vector<16x1xf32>
    %54 = arith.addf %50, %53 : vector<16x1xf32>
    %55 = math.rsqrt %54 : vector<16x1xf32>
    %56 = vector.broadcast %55 : vector<16x1xf32> to vector<16x128xf32>
    %57 = arith.mulf %52, %56 : vector<16x128xf32>
    %58 = vector.broadcast %38 : vector<1x128xf32> to vector<16x128xf32>
    %59 = arith.mulf %57, %58 : vector<16x128xf32>
    %60 = vector.broadcast %39 : vector<1x128xf32> to vector<16x128xf32>
    %61 = arith.addf %59, %60 : vector<16x128xf32>
    %62 = arith.truncf %61 : vector<16x128xf32> to vector<16x128xbf16>
    %c0_27 = arith.constant 0 : index
    %c0_28 = arith.constant 0 : index
    %63 = vector.load %arg11[%c0_27, %c0_28] : memref<128x512xbf16, #tpu.memory_space<vmem>>, vector<128x512xbf16>
    %cst_29 = arith.constant dense<0.000000e+00> : vector<16x512xf32>
    %64 = tpu.matmul %62, %63, %cst_29 {dimension_numbers = #tpu.dot_dimension_numbers<[1], [0], [0], [1], [0, 0, 1, 1], [], []>} : vector<16x128xbf16>, vector<128x512xbf16>, vector<16x512xf32> -> vector<16x512xf32>
    %c0_30 = arith.constant 0 : index
    %c0_31 = arith.constant 0 : index
    %65 = vector.load %arg12[%c0_30, %c0_31] : memref<1x512xf32, #tpu.memory_space<vmem>>, vector<1x512xf32>
    %66 = vector.broadcast %65 : vector<1x512xf32> to vector<16x512xf32>
    %67 = arith.addf %64, %66 : vector<16x512xf32>
    %cst_32 = arith.constant 5.000000e-01 : f32
    %68 = vector.broadcast %cst_32 : f32 to vector<16x512xf32>
    %69 = arith.mulf %68, %67 : vector<16x512xf32>
    %cst_33 = arith.constant 4.471500e-02 : f32
    %70 = vector.broadcast %cst_33 : f32 to vector<16x512xf32>
    %71 = arith.mulf %70, %67 : vector<16x512xf32>
    %72 = arith.mulf %71, %67 : vector<16x512xf32>
    %73 = arith.mulf %72, %67 : vector<16x512xf32>
    %74 = arith.addf %67, %73 : vector<16x512xf32>
    %cst_34 = arith.constant 0.797884583 : f32
    %75 = vector.broadcast %cst_34 : f32 to vector<16x512xf32>
    %76 = arith.mulf %75, %74 : vector<16x512xf32>
    %77 = math.tanh %76 : vector<16x512xf32>
    %cst_35 = arith.constant 1.000000e+00 : f32
    %78 = vector.broadcast %cst_35 : f32 to vector<16x512xf32>
    %79 = arith.addf %78, %77 : vector<16x512xf32>
    %80 = arith.mulf %69, %79 : vector<16x512xf32>
    %81 = arith.truncf %80 : vector<16x512xf32> to vector<16x512xbf16>
    %c0_36 = arith.constant 0 : index
    %c0_37 = arith.constant 0 : index
    %82 = vector.load %arg13[%c0_36, %c0_37] : memref<512x128xbf16, #tpu.memory_space<vmem>>, vector<512x128xbf16>
    %cst_38 = arith.constant dense<0.000000e+00> : vector<16x128xf32>
    %83 = tpu.matmul %81, %82, %cst_38 {dimension_numbers = #tpu.dot_dimension_numbers<[1], [0], [0], [1], [0, 0, 1, 1], [], []>} : vector<16x512xbf16>, vector<512x128xbf16>, vector<16x128xf32> -> vector<16x128xf32>
    %c0_39 = arith.constant 0 : index
    %c0_40 = arith.constant 0 : index
    %84 = vector.load %arg14[%c0_39, %c0_40] : memref<1x128xf32, #tpu.memory_space<vmem>>, vector<1x128xf32>
    %85 = vector.broadcast %84 : vector<1x128xf32> to vector<16x128xf32>
    %86 = arith.addf %83, %85 : vector<16x128xf32>
    %87 = arith.addf %61, %86 : vector<16x128xf32>
    %c0_41 = arith.constant 0 : index
    %c0_42 = arith.constant 0 : index
    %88 = vector.load %arg15[%c0_41, %c0_42] : memref<1x128xf32, #tpu.memory_space<vmem>>, vector<1x128xf32>
    %c0_43 = arith.constant 0 : index
    %c0_44 = arith.constant 0 : index
    %89 = vector.load %arg16[%c0_43, %c0_44] : memref<1x128xf32, #tpu.memory_space<vmem>>, vector<1x128xf32>
    %cst_45 = arith.constant dense<0.000000e+00> : vector<16xf32>
    %90 = vector.multi_reduction <add>, %87, %cst_45 [1] : vector<16x128xf32> to vector<16xf32>
    %91 = vector.shape_cast %90 : vector<16xf32> to vector<16x1xf32>
    %cst_46 = arith.constant 1.280000e+02 : f32
    %92 = vector.broadcast %cst_46 : f32 to vector<16x1xf32>
    %93 = arith.divf %91, %92 : vector<16x1xf32>
    %94 = vector.broadcast %93 : vector<16x1xf32> to vector<16x128xf32>
    %95 = arith.subf %87, %94 : vector<16x128xf32>
    %96 = arith.mulf %95, %95 : vector<16x128xf32>
    %cst_47 = arith.constant dense<0.000000e+00> : vector<16xf32>
    %97 = vector.multi_reduction <add>, %96, %cst_47 [1] : vector<16x128xf32> to vector<16xf32>
    %98 = vector.shape_cast %97 : vector<16xf32> to vector<16x1xf32>
    %cst_48 = arith.constant 1.280000e+02 : f32
    %99 = vector.broadcast %cst_48 : f32 to vector<16x1xf32>
    %100 = arith.divf %98, %99 : vector<16x1xf32>
    %101 = vector.broadcast %93 : vector<16x1xf32> to vector<16x128xf32>
    %102 = arith.subf %87, %101 : vector<16x128xf32>
    %cst_49 = arith.constant 9.99999974E-6 : f32
    %103 = vector.broadcast %cst_49 : f32 to vector<16x1xf32>
    %104 = arith.addf %100, %103 : vector<16x1xf32>
    %105 = math.rsqrt %104 : vector<16x1xf32>
    %106 = vector.broadcast %105 : vector<16x1xf32> to vector<16x128xf32>
    %107 = arith.mulf %102, %106 : vector<16x128xf32>
    %108 = vector.broadcast %88 : vector<1x128xf32> to vector<16x128xf32>
    %109 = arith.mulf %107, %108 : vector<16x128xf32>
    %110 = vector.broadcast %89 : vector<1x128xf32> to vector<16x128xf32>
    %111 = arith.addf %109, %110 : vector<16x128xf32>
    %112 = arith.truncf %111 : vector<16x128xf32> to vector<16x128xbf16>
    %c0_50 = arith.constant 0 : index
    %c0_51 = arith.constant 0 : index
    %c0_52 = arith.constant 0 : index
    %113 = vector.load %arg3[%c0_50, %c0_51, %c0_52] : memref<1x1x16xbf16, #tpu.memory_space<vmem>>, vector<1x1x16xbf16>
    %114 = vector.shape_cast %113 : vector<1x1x16xbf16> to vector<1x16xbf16>
    %cst_53 = arith.constant dense<0.000000e+00> : vector<1x128xf32>
    %115 = tpu.matmul %114, %112, %cst_53 {dimension_numbers = #tpu.dot_dimension_numbers<[1], [0], [0], [1], [0, 0, 1, 1], [], []>} : vector<1x16xbf16>, vector<16x128xbf16>, vector<1x128xf32> -> vector<1x128xf32>
    %c0_54 = arith.constant 0 : index
    %c0_55 = arith.constant 0 : index
    %c0_56 = arith.constant 0 : index
    %116 = vector.load %arg4[%c0_54, %c0_55, %c0_56] : memref<1x16x16xbf16, #tpu.memory_space<vmem>>, vector<1x16x16xbf16>
    %117 = vector.shape_cast %116 : vector<1x16x16xbf16> to vector<16x16xbf16>
    %cst_57 = arith.constant dense<0.000000e+00> : vector<16x128xf32>
    %118 = tpu.matmul %117, %112, %cst_57 {dimension_numbers = #tpu.dot_dimension_numbers<[1], [0], [0], [1], [0, 0, 1, 1], [], []>} : vector<16x16xbf16>, vector<16x128xbf16>, vector<16x128xf32> -> vector<16x128xf32>
    %119 = arith.truncf %118 : vector<16x128xf32> to vector<16x128xbf16>
    %c0_58 = arith.constant 0 : index
    %c0_59 = arith.constant 0 : index
    %120 = vector.load %arg17[%c0_58, %c0_59] : memref<128x256xbf16, #tpu.memory_space<vmem>>, vector<128x256xbf16>
    %cst_60 = arith.constant dense<0.000000e+00> : vector<16x256xf32>
    %121 = tpu.matmul %119, %120, %cst_60 {dimension_numbers = #tpu.dot_dimension_numbers<[1], [0], [0], [1], [0, 0, 1, 1], [], []>} : vector<16x128xbf16>, vector<128x256xbf16>, vector<16x256xf32> -> vector<16x256xf32>
    %122 = arith.truncf %115 : vector<1x128xf32> to vector<1x128xbf16>
    %c0_61 = arith.constant 0 : index
    %c0_62 = arith.constant 0 : index
    %123 = vector.load %arg18[%c0_61, %c0_62] : memref<128x256xbf16, #tpu.memory_space<vmem>>, vector<128x256xbf16>
    %cst_63 = arith.constant dense<0.000000e+00> : vector<1x256xf32>
    %124 = tpu.matmul %122, %123, %cst_63 {dimension_numbers = #tpu.dot_dimension_numbers<[1], [0], [0], [1], [0, 0, 1, 1], [], []>} : vector<1x128xbf16>, vector<128x256xbf16>, vector<1x256xf32> -> vector<1x256xf32>
    %125 = vector.broadcast %124 : vector<1x256xf32> to vector<16x256xf32>
    %126 = arith.addf %121, %125 : vector<16x256xf32>
    %c0_64 = arith.constant 0 : index
    %c0_65 = arith.constant 0 : index
    %127 = vector.load %arg19[%c0_64, %c0_65] : memref<1x256xf32, #tpu.memory_space<vmem>>, vector<1x256xf32>
    %128 = vector.broadcast %127 : vector<1x256xf32> to vector<16x256xf32>
    %129 = arith.addf %126, %128 : vector<16x256xf32>
    %cst_66 = arith.constant 5.000000e-01 : f32
    %130 = vector.broadcast %cst_66 : f32 to vector<16x256xf32>
    %131 = arith.mulf %130, %129 : vector<16x256xf32>
    %cst_67 = arith.constant 4.471500e-02 : f32
    %132 = vector.broadcast %cst_67 : f32 to vector<16x256xf32>
    %133 = arith.mulf %132, %129 : vector<16x256xf32>
    %134 = arith.mulf %133, %129 : vector<16x256xf32>
    %135 = arith.mulf %134, %129 : vector<16x256xf32>
    %136 = arith.addf %129, %135 : vector<16x256xf32>
    %cst_68 = arith.constant 0.797884583 : f32
    %137 = vector.broadcast %cst_68 : f32 to vector<16x256xf32>
    %138 = arith.mulf %137, %136 : vector<16x256xf32>
    %139 = math.tanh %138 : vector<16x256xf32>
    %cst_69 = arith.constant 1.000000e+00 : f32
    %140 = vector.broadcast %cst_69 : f32 to vector<16x256xf32>
    %141 = arith.addf %140, %139 : vector<16x256xf32>
    %142 = arith.mulf %131, %141 : vector<16x256xf32>
    %143 = arith.truncf %142 : vector<16x256xf32> to vector<16x256xbf16>
    %c0_70 = arith.constant 0 : index
    %c0_71 = arith.constant 0 : index
    %144 = vector.load %arg20[%c0_70, %c0_71] : memref<256x256xbf16, #tpu.memory_space<vmem>>, vector<256x256xbf16>
    %cst_72 = arith.constant dense<0.000000e+00> : vector<16x256xf32>
    %145 = tpu.matmul %143, %144, %cst_72 {dimension_numbers = #tpu.dot_dimension_numbers<[1], [0], [0], [1], [0, 0, 1, 1], [], []>} : vector<16x256xbf16>, vector<256x256xbf16>, vector<16x256xf32> -> vector<16x256xf32>
    %c0_73 = arith.constant 0 : index
    %c0_74 = arith.constant 0 : index
    %146 = vector.load %arg21[%c0_73, %c0_74] : memref<1x256xf32, #tpu.memory_space<vmem>>, vector<1x256xf32>
    %147 = vector.broadcast %146 : vector<1x256xf32> to vector<16x256xf32>
    %148 = arith.addf %145, %147 : vector<16x256xf32>
    %cst_75 = arith.constant 5.000000e-01 : f32
    %149 = vector.broadcast %cst_75 : f32 to vector<16x256xf32>
    %150 = arith.mulf %149, %148 : vector<16x256xf32>
    %cst_76 = arith.constant 4.471500e-02 : f32
    %151 = vector.broadcast %cst_76 : f32 to vector<16x256xf32>
    %152 = arith.mulf %151, %148 : vector<16x256xf32>
    %153 = arith.mulf %152, %148 : vector<16x256xf32>
    %154 = arith.mulf %153, %148 : vector<16x256xf32>
    %155 = arith.addf %148, %154 : vector<16x256xf32>
    %cst_77 = arith.constant 0.797884583 : f32
    %156 = vector.broadcast %cst_77 : f32 to vector<16x256xf32>
    %157 = arith.mulf %156, %155 : vector<16x256xf32>
    %158 = math.tanh %157 : vector<16x256xf32>
    %cst_78 = arith.constant 1.000000e+00 : f32
    %159 = vector.broadcast %cst_78 : f32 to vector<16x256xf32>
    %160 = arith.addf %159, %158 : vector<16x256xf32>
    %161 = arith.mulf %150, %160 : vector<16x256xf32>
    %162 = vector.shape_cast %161 : vector<16x256xf32> to vector<16x2x128xf32>
    %c0_79 = arith.constant 0 : index
    %c0_80 = arith.constant 0 : index
    %163 = vector.load %arg22[%c0_79, %c0_80] : memref<2x128xf32, #tpu.memory_space<vmem>>, vector<2x128xf32>
    %164 = vector.shape_cast %163 : vector<2x128xf32> to vector<1x2x128xf32>
    %165 = vector.broadcast %164 : vector<1x2x128xf32> to vector<16x2x128xf32>
    %166 = arith.mulf %162, %165 : vector<16x2x128xf32>
    %cst_81 = arith.constant dense<0.000000e+00> : vector<16x2xf32>
    %167 = vector.multi_reduction <add>, %166, %cst_81 [2] : vector<16x2x128xf32> to vector<16x2xf32>
    %c0_82 = arith.constant 0 : index
    %c0_83 = arith.constant 0 : index
    %168 = vector.load %arg23[%c0_82, %c0_83] : memref<1x2xf32, #tpu.memory_space<vmem>>, vector<1x2xf32>
    %169 = vector.broadcast %168 : vector<1x2xf32> to vector<16x2xf32>
    %170 = arith.addf %167, %169 : vector<16x2xf32>
    %c0_84 = arith.constant 0 : index
    %c0_85 = arith.constant 0 : index
    %c0_86 = arith.constant 0 : index
    %171 = vector.load %arg24[%c0_84, %c0_85, %c0_86] : memref<1x16x2xf32, #tpu.memory_space<vmem>>, vector<1x16x2xf32>
    %172 = vector.shape_cast %171 : vector<1x16x2xf32> to vector<16x2xf32>
    %173 = vector.shape_cast %170 : vector<16x2xf32> to vector<1x16x2xf32>
    tpu.vector_store %arg24[%c0_84, %c0_85, %c0_86], %173 {strides = array<i32>} : memref<1x16x2xf32, #tpu.memory_space<vmem>>, vector<1x16x2xf32>,
    return
  }
  func.func @transform_0(%arg0: i32) -> (i32, i32, i32) {
    %c0_i32 = arith.constant 0 : i32
    %c0_i32_0 = arith.constant 0 : i32
    %c0_i32_1 = arith.constant 0 : i32
    return %arg0, %c0_i32, %c0_i32_0 : i32, i32, i32
  }
  func.func @transform_1(%arg0: i32) -> (i32, i32, i32) {
    %c0_i32 = arith.constant 0 : i32
    %c0_i32_0 = arith.constant 0 : i32
    %c0_i32_1 = arith.constant 0 : i32
    return %arg0, %c0_i32, %c0_i32_0 : i32, i32, i32
  }
  func.func @transform_2(%arg0: i32) -> (i32, i32, i32) {
    %c0_i32 = arith.constant 0 : i32
    %c0_i32_0 = arith.constant 0 : i32
    %c0_i32_1 = arith.constant 0 : i32
    return %arg0, %c0_i32, %c0_i32_0 : i32, i32, i32
  }
  func.func @transform_3(%arg0: i32) -> (i32, i32, i32) {
    %c0_i32 = arith.constant 0 : i32
    %c0_i32_0 = arith.constant 0 : i32
    %c0_i32_1 = arith.constant 0 : i32
    return %arg0, %c0_i32, %c0_i32_0 : i32, i32, i32
  }
  func.func @transform_4(%arg0: i32) -> (i32, i32) {
    %c0_i32 = arith.constant 0 : i32
    %c0_i32_0 = arith.constant 0 : i32
    %c0_i32_1 = arith.constant 0 : i32
    return %c0_i32, %c0_i32_0 : i32, i32
  }
  func.func @transform_5(%arg0: i32) -> (i32, i32) {
    %c0_i32 = arith.constant 0 : i32
    %c0_i32_0 = arith.constant 0 : i32
    %c0_i32_1 = arith.constant 0 : i32
    return %c0_i32, %c0_i32_0 : i32, i32
  }
  func.func @transform_6(%arg0: i32) -> (i32, i32) {
    %c0_i32 = arith.constant 0 : i32
    %c0_i32_0 = arith.constant 0 : i32
    %c0_i32_1 = arith.constant 0 : i32
    return %c0_i32, %c0_i32_0 : i32, i32
  }
  func.func @transform_7(%arg0: i32) -> (i32, i32) {
    %c0_i32 = arith.constant 0 : i32
    %c0_i32_0 = arith.constant 0 : i32
    %c0_i32_1 = arith.constant 0 : i32
    return %c0_i32, %c0_i32_0 : i32, i32
  }
  func.func @transform_8(%arg0: i32) -> (i32, i32) {
    %c0_i32 = arith.constant 0 : i32
    %c0_i32_0 = arith.constant 0 : i32
    %c0_i32_1 = arith.constant 0 : i32
    return %c0_i32, %c0_i32_0 : i32, i32
  }
  func.func @transform_9(%arg0: i32) -> (i32, i32) {
    %c0_i32 = arith.constant 0 : i32
    %c0_i32_0 = arith.constant 0 : i32
    %c0_i32_1 = arith.constant 0 : i32
    return %c0_i32, %c0_i32_0 : i32, i32
  }
  func.func @transform_10(%arg0: i32) -> (i32, i32) {
    %c0_i32 = arith.constant 0 : i32
    %c0_i32_0 = arith.constant 0 : i32
    %c0_i32_1 = arith.constant 0 : i32
    return %c0_i32, %c0_i32_0 : i32, i32
  }
  func.func @transform_11(%arg0: i32) -> (i32, i32) {
    %c0_i32 = arith.constant 0 : i32
    %c0_i32_0 = arith.constant 0 : i32
    %c0_i32_1 = arith.constant 0 : i32
    return %c0_i32, %c0_i32_0 : i32, i32
  }
  func.func @transform_12(%arg0: i32) -> (i32, i32) {
    %c0_i32 = arith.constant 0 : i32
    %c0_i32_0 = arith.constant 0 : i32
    %c0_i32_1 = arith.constant 0 : i32
    return %c0_i32, %c0_i32_0 : i32, i32
  }
  func.func @transform_13(%arg0: i32) -> (i32, i32) {
    %c0_i32 = arith.constant 0 : i32
    %c0_i32_0 = arith.constant 0 : i32
    %c0_i32_1 = arith.constant 0 : i32
    return %c0_i32, %c0_i32_0 : i32, i32
  }
  func.func @transform_14(%arg0: i32) -> (i32, i32) {
    %c0_i32 = arith.constant 0 : i32
    %c0_i32_0 = arith.constant 0 : i32
    %c0_i32_1 = arith.constant 0 : i32
    return %c0_i32, %c0_i32_0 : i32, i32
  }
  func.func @transform_15(%arg0: i32) -> (i32, i32) {
    %c0_i32 = arith.constant 0 : i32
    %c0_i32_0 = arith.constant 0 : i32
    %c0_i32_1 = arith.constant 0 : i32
    return %c0_i32, %c0_i32_0 : i32, i32
  }
  func.func @transform_16(%arg0: i32) -> (i32, i32) {
    %c0_i32 = arith.constant 0 : i32
    %c0_i32_0 = arith.constant 0 : i32
    %c0_i32_1 = arith.constant 0 : i32
    return %c0_i32, %c0_i32_0 : i32, i32
  }
  func.func @transform_17(%arg0: i32) -> (i32, i32) {
    %c0_i32 = arith.constant 0 : i32
    %c0_i32_0 = arith.constant 0 : i32
    %c0_i32_1 = arith.constant 0 : i32
    return %c0_i32, %c0_i32_0 : i32, i32
  }
  func.func @transform_18(%arg0: i32) -> (i32, i32) {
    %c0_i32 = arith.constant 0 : i32
    %c0_i32_0 = arith.constant 0 : i32
    %c0_i32_1 = arith.constant 0 : i32
    return %c0_i32, %c0_i32_0 : i32, i32
  }
  func.func @transform_19(%arg0: i32) -> (i32, i32) {
    %c0_i32 = arith.constant 0 : i32
    %c0_i32_0 = arith.constant 0 : i32
    %c0_i32_1 = arith.constant 0 : i32
    return %c0_i32, %c0_i32_0 : i32, i32
  }
  func.func @transform_20(%arg0: i32) -> (i32, i32) {
    %c0_i32 = arith.constant 0 : i32
    %c0_i32_0 = arith.constant 0 : i32
    %c0_i32_1 = arith.constant 0 : i32
    return %c0_i32, %c0_i32_0 : i32, i32
  }
  func.func @transform_21(%arg0: i32) -> (i32, i32) {
    %c0_i32 = arith.constant 0 : i32
    %c0_i32_0 = arith.constant 0 : i32
    %c0_i32_1 = arith.constant 0 : i32
    return %c0_i32, %c0_i32_0 : i32, i32
  }
  func.func @transform_22(%arg0: i32) -> (i32, i32) {
    %c0_i32 = arith.constant 0 : i32
    %c0_i32_0 = arith.constant 0 : i32
    %c0_i32_1 = arith.constant 0 : i32
    return %c0_i32, %c0_i32_0 : i32, i32
  }
  func.func @transform_23(%arg0: i32) -> (i32, i32, i32) {
    %c0_i32 = arith.constant 0 : i32
    %c0_i32_0 = arith.constant 0 : i32
    %c0_i32_1 = arith.constant 0 : i32
    return %arg0, %c0_i32, %c0_i32_0 : i32, i32, i32
  }
}

</mosaic_0001>

<bundles_post_ra>
// kernel: tpu_custom_call.1
= control target key start
LH: loop header
LB: loop body
LE: loop exit
PB: predicated region body
PF: predicated region fallthrough
CT: control target
= control target key end

     0   :  { %s5403_s0 = inlined_call_operand.hbm [shape: bf16[2,16,128], index: 0, kind: input, shape index: {}]   ;;  %s5404_s1 = inlined_call_operand.hbm [shape: f32[2,1,16], index: 1, kind: input, shape index: {}]   ;;  %s5405_s2 = inlined_call_operand.vmem [shape: bf16[2,1,16], index: 2, kind: input, shape index: {}]   ;;  %s5406_s3 = inlined_call_operand.hbm [shape: bf16[2,16,16], index: 3, kind: input, shape index: {}]   ;;  %s5407_s4 = inlined_call_operand.hbm [shape: bf16[128,384], index: 4, kind: input, shape index: {}]   ;;  %s5408_s5 = inlined_call_operand.vmem [shape: f32[1,384], index: 5, kind: input, shape index: {}]   ;;  %s5409_s6 = inlined_call_operand.hbm [shape: bf16[128,128], index: 6, kind: input, shape index: {}]   ;;  %s5410_s7 = inlined_call_operand.vmem [shape: f32[1,128], index: 7, kind: input, shape index: {}]   ;;  %s5411_s8 = inlined_call_operand.vmem [shape: f32[1,128], index: 8, kind: input, shape index: {}]   ;;  %s5412_s9 = inlined_call_operand.vmem [shape: f32[1,128], index: 9, kind: input, shape index: {}]   ;;  %s5413_s10 = inlined_call_operand.hbm [shape: bf16[128,512], index: 10, kind: input, shape index: {}]   ;;  %s5414_s11 = inlined_call_operand.vmem [shape: f32[1,512], index: 11, kind: input, shape index: {}]   ;;  %s5415_s12 = inlined_call_operand.hbm [shape: bf16[512,128], index: 12, kind: input, shape index: {}]   ;;  %s5416_s13 = inlined_call_operand.vmem [shape: f32[1,128], index: 13, kind: input, shape index: {}]   ;;  %s5417_s14 = inlined_call_operand.vmem [shape: f32[1,128], index: 14, kind: input, shape index: {}]   ;;  %s5418_s15 = inlined_call_operand.vmem [shape: f32[1,128], index: 15, kind: input, shape index: {}]   ;;  %s5419_s16 = inlined_call_operand.hbm [shape: bf16[128,256], index: 16, kind: input, shape index: {}]   ;;  %s5420_s17 = inlined_call_operand.hbm [shape: bf16[128,256], index: 17, kind: input, shape index: {}]   ;;  %s5421_s18 = inlined_call_operand.vmem [shape: f32[1,256], index: 18, kind: input, shape index: {}]   ;;  %s5422_s19 = inlined_call_operand.hbm [shape: bf16[256,256], index: 19, kind: input, shape index: {}]   ;;  %s5423_s20 = inlined_call_operand.vmem [shape: f32[1,256], index: 20, kind: input, shape index: {}]   ;;  %s5424_s21 = inlined_call_operand.vmem [shape: f32[2,128], index: 21, kind: input, shape index: {}]   ;;  %s5425_s22 = inlined_call_operand.vmem [shape: f32[1,2], index: 22, kind: input, shape index: {}]   ;;  %s5426_s23 = inlined_call_operand.vmem [shape: f32[2,16,2], index: 23, kind: output, shape index: {}]  }
   0x1   :  { %5457 = sst [smem:[#allocation27_spill]] %s5403_s0 }
   0x2   :  { %5458 = sst [smem:[#allocation28_spill]] %s5404_s1 }
   0x3   :  { %5459 = sst [smem:[#allocation29_spill]] %s5405_s2 }
   0x4   :  { %5460 = sst [smem:[#allocation30_spill]] %s5406_s3 }
   0x5   :  { %5461 = sst [smem:[#allocation31_spill]] %s5407_s4 }
   0x6   :  { %5462 = sst [smem:[#allocation32_spill]] %s5408_s5 }
   0x7   :  { %5463 = sst [smem:[#allocation33_spill]] %s5409_s6 }
   0x8   :  { %5464 = sst [smem:[#allocation34_spill]] %s5410_s7 }
   0x9   :  { %5465 = sst [smem:[#allocation35_spill]] %s5412_s9 }
   0xa   :  { %5466 = sst [smem:[#allocation36_spill]] %s5413_s10 }
   0xb   :  { %5467 = sst [smem:[#allocation37_spill]] %s5414_s11 }
   0xc   :  { %5468 = sst [smem:[#allocation38_spill]] %s5416_s13 }
   0xd   :  { %5469 = sst [smem:[#allocation39_spill]] %s5417_s14 }
   0xe   :  { %5470 = sst [smem:[#allocation40_spill]] %s5418_s15 }
   0xf   :  { %5471 = sst [smem:[#allocation41_spill]] %s5419_s16 }
  0x10   :  { %5472 = sst [smem:[#allocation42_spill]] %s5421_s18 }
  0x11   :  { %5473 = sst [smem:[#allocation43_spill]] %s5423_s20 }
  0x12   :  { %5474 = sst [smem:[#allocation44_spill]] %s5424_s21 }
  0x13   :  { %5475 = sst [smem:[#allocation45_spill]] %s5425_s22 }
  0x14   :  { %5476 = sst [smem:[#allocation46_spill]] %s5426_s23 }
  0x15   :  { %28 = vsyncpa [#allocation3], 0 }
  0x16   :  { %30 = vsyncpa [#allocation3 + $0x1], 0 }
  0x17   :  { %31 = vsyncpa [#allocation5], 0 }
  0x18   :  { %33 = vsyncpa [#allocation5 + $0x1], 0 }
  0x19   :  { %34 = vsyncpa [#allocation8], 0 }
  0x1a   :  { %35 = vsyncpa [#allocation11], 0 }
  0x1b   :  { %36 = vsyncpa [#allocation14], 0 }
  0x1c   :  { %37 = vsyncpa [#allocation17], 0  ;;  %s4739_s4 = smov 0   ;;  %s4741_s30 = smov 0  }
  0x1d   :  { %s4743_s24 = smov 0   ;;  %s4745_s25 = smov 0  }
  0x1e LB: > { %5477 = sst [smem:[#allocation24_spill]] %s4590_s24  ;;  %s4596_s5 = smov [#allocation7]   ;;  %s4594_s25 = sphi %s4745_s25, %s5526_s25   ;;  %s4590_s24 = sphi %s4743_s24, %s5528_s24   ;;  %s4586_s30 = sphi %s4741_s30, %s5530_s30   ;;  %s4582_s4 = sphi %s4739_s4, %s5529_s4  }
  0x1f   : > { %s589_s1 = sshll.u32 %s4596_s5, 4  ;;  %s4760_s26 = sadd.s32 4294967295, %s4594_s25   ;;  %s4765_s1 = int_to_ptr.vmem [resolvable:$true] %s589_s1 }
  0x20   : > { %p3512_p0 = scmp.ge.s32.totalorder %s4594_s25, 1  ;;  %p5432_p1 = scmp.eq.s32.totalorder %s4760_s26, 0 }
  0x21   : > { %p577_p2 = scmp.lt.s32.totalorder %s4594_s25, 3  ;;  %s4597_s6 = smov [#allocation10]  }
  0x22   : > { %s627_s27 = sshll.u32 %s4597_s6, 4  ;;  %s4598_s28 = smov [#allocation13]   ;;  %s4779_s27 = int_to_ptr.vmem [resolvable:$true] %s627_s27 }
  0x23   : > { %p4767_p3 = pnand %p3512_p0, %p577_p2  ;;  %s4781_s29 = sshll.u32 %s4598_s28, 4  ;;  %s666_s29 = int_to_ptr.vmem [resolvable:$true] %s4781_s29 }
  0x24   : > { %s5480_s5 = sld [smem:[#allocation31_spill]] }
  0x25   : > { %s5478_s2 = scalar_select %p4767_p3, 1, 0 }
  0x26   : > { %p3886_p4 = pneg %p4767_p3 }
  0x28   : > { %p4775_p5 = pnand %p3886_p4, %p5432_p1 }
  0x2a   : > { %s5479_s7 = scalar_select %p4775_p5, 1, 0 }
  0x2b   : > { %s4254_s23 = scalar_lea.hbm %s5480_s5, 3072  ;;  %p4791_p7 = pneg %p4775_p5 }
  0x2c   : > { %p4255_p6 = scmp.ne.s32.totalorder %s5480_s5, %s4254_s23  ;;  %p4261_p10 = scmp.lt.u32.totalorder %s4254_s23, %s5480_s5 }
  0x2d   : > { %s5481_s6 = scalar_select %p4791_p7, 1, 0 }
  0x2e   : > { %p4257_p8 = pnand %p4791_p7, %p4255_p6 }
  0x30   : > { %p4258_p9 = pneg %p4257_p8 }
  0x32   : > { %p4263_p11 = pnand %p4261_p10, %p4258_p9 }
  0x34   : > { %4266 = shalt.err (!%p4263_p11)
}
  0x35   : > { %s4267_s21 = scalar_lea.vmem %s4765_s1, 3072  ;;  %p4275_p2 = scmp.lt.s32.totalorder %s4765_s1, %s4765_s1 }
  0x36   : > { %p4268_p12 = scmp.ne.s32.totalorder %s4765_s1, %s4267_s21  ;;  %p4276_p4 = scmp.lt.s32.totalorder %s4267_s21, %s4267_s21 }
  0x38   : > { %p4270_p13 = pnand %p4268_p12, %p4791_p7  ;;  %p4277_p6 = por %p4276_p4, %p4275_p2 }
  0x3a   : > { %p4271_p0 = pneg %p4270_p13 }
  0x3c   : > { %p4278_p8 = pnand %p4277_p6, %p4271_p0 }
  0x3e   : > { %4281 = shalt.err (!%p4278_p8)
}
  0x3f   : > { %s4599_s22 = smov 192   ;;  %s4600_s20 = smov 12  }
  0x40   : > { %3889 = dma.hbm_to_vmem [thread:$0]  (!%p4775_p5), %s5480_s5, 3072, %s4765_s1, [#allocation8], %s4599_s22, %s4599_s22, %s4600_s20  }
  0x41   : > { %s5482_s10 = sld [smem:[#allocation36_spill]] }
  0x47   : > { %s4282_s18 = scalar_lea.hbm %s5482_s10, 4096 }
  0x48   : > { %p4283_p9 = scmp.ne.s32.totalorder %s5482_s10, %s4282_s18  ;;  %p4289_p12 = scmp.lt.u32.totalorder %s4282_s18, %s5482_s10 }
  0x4a   : > { %p4285_p10 = pnand %p4283_p9, %p4791_p7 }
  0x4c   : > { %p4286_p11 = pneg %p4285_p10 }
  0x4e   : > { %p4291_p13 = pnand %p4289_p12, %p4286_p11 }
  0x50   : > { %4294 = shalt.err (!%p4291_p13)
}
  0x51   : > { %s4295_s1 = scalar_lea.vmem %s4779_s27, 4096  ;;  %p4303_p6 = scmp.lt.s32.totalorder %s4779_s27, %s4779_s27 }
  0x52   : > { %p4296_p0 = scmp.ne.s32.totalorder %s4779_s27, %s4295_s1  ;;  %p4304_p8 = scmp.lt.s32.totalorder %s4295_s1, %s4295_s1 }
  0x54   : > { %p4298_p2 = pnand %p4296_p0, %p4791_p7  ;;  %p4305_p9 = por %p4304_p8, %p4303_p6 }
  0x56   : > { %p4299_p4 = pneg %p4298_p2 }
  0x58   : > { %p4306_p10 = pnand %p4305_p9, %p4299_p4 }
  0x5a   : > { %4309 = shalt.err (!%p4306_p10)
}
  0x5b   : > { %s4601_s14 = smov 256   ;;  %s4602_s13 = smov 16  }
  0x5c   : > { %3895 = dma.hbm_to_vmem [thread:$0]  (!%p4775_p5), %s5482_s10, 4096, %s4779_s27, [#allocation11], %s4601_s14, %s4601_s14, %s4602_s13  }
  0x5d   : > { %s5483_s16 = sld [smem:[#allocation41_spill]] }
  0x63   : > { %s4310_s23 = scalar_lea.hbm %s5483_s16, 2048 }
  0x64   : > { %p4311_p11 = scmp.ne.s32.totalorder %s5483_s16, %s4310_s23  ;;  %p4317_p0 = scmp.lt.u32.totalorder %s4310_s23, %s5483_s16 }
  0x66   : > { %p4313_p12 = pnand %p4311_p11, %p4791_p7 }
  0x68   : > { %p4314_p13 = pneg %p4313_p12 }
  0x6a   : > { %p4319_p2 = pnand %p4317_p0, %p4314_p13 }
  0x6c   : > { %4322 = shalt.err (!%p4319_p2)
}
  0x6d   : > { %s4323_s1 = scalar_lea.vmem %s666_s29, 2048  ;;  %p4331_p9 = scmp.lt.s32.totalorder %s666_s29, %s666_s29 }
  0x6e   : > { %p4324_p4 = scmp.ne.s32.totalorder %s666_s29, %s4323_s1  ;;  %p4332_p10 = scmp.lt.s32.totalorder %s4323_s1, %s4323_s1 }
  0x70   : > { %p4326_p6 = pnand %p4324_p4, %p4791_p7  ;;  %p4333_p1 = por %p4332_p10, %p4331_p9 }
  0x72   : > { %p4327_p8 = pneg %p4326_p6 }
  0x74   : > { %p4334_p3 = pnand %p4333_p1, %p4327_p8 }
  0x76   : > { %4337 = shalt.err (!%p4334_p3)
}
  0x77   : > { %s5434_s27 = smov 128   ;;  %s5436_s14 = smov 8  }
  0x78   : > { %3901 = dma.hbm_to_vmem [thread:$0]  (!%p4775_p5), %s5483_s16, 2048, %s666_s29, [#allocation14], %s5434_s27, %s5434_s27, %s5436_s14  }
  0x79   : > { %s4858_s18 = sadd.s32 1, %s4594_s25   ;;  %s50_s20 = sadd.s32 1, %s4590_s24 }
  0x7a   : > { %5484 = sst [smem:[#allocation25_spill]] %s4858_s18  ;;  %s47_s22 = ssub.s32 %s4594_s25, %s4858_s18 }
  0x7b   : > { %p48_p1 = scmp.eq.s32.totalorder %s47_s22, 0  ;;  %p57_p3 = scmp.ne.s32.totalorder %s4590_s24, %s4586_s30 }
  0x7c   : > { %p58_p11 = scmp.eq.s32.totalorder %s4594_s25, 0  ;;  %p63_p12 = scmp.ne.s32.totalorder %s4586_s30, %s4582_s4 }
  0x7d   : > { %s4869_s23 = scalar_select %p48_p1, %s4590_s24, %s50_s20  }
  0x7e   : > { %p59_p13 = por %p58_p11, %p57_p3  ;;  %p5486_p0 = scmp.eq.s32.totalorder %s4760_s26, 0 }
  0x7f   : > { %5485 = sst [smem:[#allocation26_spill]] %s4869_s23  ;;  %p3925_p4 = scmp.lt.s32.totalorder %s4594_s25, 2 }
  0x80   : > { %p4873_p2 = por %p5486_p0, %p63_p12  ;;  %s4879_s29 = sand.u32 1, %s4590_s24  }
  0x81   : > { %s5439_s0 = sshll.u32 %s4879_s29, 3  ;;  %s738_s28 = sand.u32 1, %s4594_s25  }
  0x82   : > { %s5487_s3 = scalar_select %p4873_p2, 1, 0 }
  0x83   : > { %p4883_p6 = pnand %p3925_p4, %p59_p13  ;;  %s3524_s4 = sshll.u32 %s4594_s25, 4 }
  0x84   : > { %s5489_s15 = sld [smem:[#allocation28_spill]]  ;;  %s741_s20 = scalar_lea.vmem [#allocation4], %s4879_s29 }
  0x85   : > { %s5488_s21 = scalar_select %p4883_p6, 1, 0 }
  0x86   : > { %s748_s27 = sshll.u32 %s741_s20, 4  ;;  %s4898_s14 = scalar_lea.vmem [#allocation6], %s5439_s0  ;;  %s4894_s27 = int_to_ptr.vmem [resolvable:$true] %s748_s27 }
  0x87   : > { %s772_s5 = sshll.u32 %s4898_s14, 4  ;;  %s4901_s10 = scalar_lea.sflag [#allocation5], %s738_s28  ;;  %s4933_s5 = int_to_ptr.vmem [resolvable:$true] %s772_s5 }
  0x88   : > { %p4907_p9 = pneg %p4883_p6 }
  0x8a   : > { %s4891_s22 = scalar_lea.hbm %s5489_s15, %s3524_s4  ;;  %s4343_s20 = scalar_lea.hbm %s5489_s15, 32 }
  0x8b   : > { %s4338_s16 = scalar_lea.hbm %s4891_s22, 16  ;;  %p4344_p3 = scmp.lt.u32.totalorder %s4891_s22, %s5489_s15 }
  0x8c   : > { %p4339_p8 = scmp.ne.s32.totalorder %s4891_s22, %s4338_s16  ;;  %p4345_p11 = scmp.lt.u32.totalorder %s4343_s20, %s4338_s16 }
  0x8d   : > { %s5490_s4 = scalar_select %p4907_p9, 1, 0 }
  0x8e   : > { %p4341_p10 = pnand %p4907_p9, %p4339_p8  ;;  %p4346_p12 = por %p4345_p11, %p4344_p3 }
  0x8f   : > { %p4347_p13 = scmp.lt.u32.totalorder %s4338_s16, %s4891_s22 }
  0x90   : > { %p4342_p1 = pneg %p4341_p10 }
  0x91   : > { %p4348_p0 = por %p4347_p13, %p4346_p12 }
  0x93   : > { %p4349_p4 = pnand %p4348_p0, %p4342_p1 }
  0x95   : > { %4352 = shalt.err (!%p4349_p4)
}
  0x96   : > { %s4353_s28 = scalar_lea.vmem %s4894_s27, 16  ;;  %s4605_s1 = smov [#allocation4]  }
  0x97   : > { %p4354_p8 = scmp.ne.s32.totalorder %s4894_s27, %s4353_s28  ;;  %s4358_s13 = sshll.u32 %s4605_s1, 4  ;;  %s4359_s13 = int_to_ptr.vmem [resolvable:$false] %s4358_s13 }
  0x98   : > { %s4360_s23 = scalar_lea.vmem %s4359_s13, 32  ;;  %p4361_p5 = scmp.lt.s32.totalorder %s4894_s27, %s4359_s13 }
  0x99   : > { %p4356_p10 = pnand %p4354_p8, %p4907_p9  ;;  %p4362_p7 = scmp.lt.s32.totalorder %s4360_s23, %s4353_s28 }
  0x9b   : > { %p4357_p2 = pneg %p4356_p10  ;;  %p4363_p3 = por %p4362_p7, %p4361_p5 }
  0x9d   : > { %p4364_p11 = pnand %p4363_p3, %p4357_p2 }
  0x9f   : > { %4367 = shalt.err (!%p4364_p11)
}
  0xa0   : > { %3914 = dma.hbm_to_vmem [thread:$0]  (!%p4883_p6), %s4891_s22, 16, %s4894_s27, %s4901_s10  }
  0xa1   : > { %s4606_s16 = smov [#allocation9]   ;;  %s5491_s28 = sld [smem:[#allocation33_spill]] }
  0xa2   : > { %s605_s0 = sshll.u32 %s4606_s16, 4  ;;  %p5492_p7 = scmp.ne.s32.totalorder %s5481_s6, 0  ;;  %s606_s0 = int_to_ptr.vmem [resolvable:$true] %s605_s0 }
  0xa7   : > { %s4368_s13 = scalar_lea.hbm %s5491_s28, 1024 }
  0xa8   : > { %p4369_p5 = scmp.ne.s32.totalorder %s5491_s28, %s4368_s13  ;;  %p4375_p12 = scmp.lt.u32.totalorder %s4368_s13, %s5491_s28 }
  0xaa   : > { %p4371_p2 = pnand %p4369_p5, %p5492_p7 }
  0xac   : > { %p4372_p1 = pneg %p4371_p2 }
  0xae   : > { %p4377_p13 = pnand %p4375_p12, %p4372_p1 }
  0xb0   : > { %4380 = shalt.err (!%p4377_p13)
}
  0xb1   : > { %s4381_s27 = scalar_lea.vmem %s606_s0, 1024  ;;  %p4389_p10 = scmp.lt.s32.totalorder %s606_s0, %s606_s0 }
  0xb2   : > { %p4382_p0 = scmp.ne.s32.totalorder %s606_s0, %s4381_s27  ;;  %p4390_p3 = scmp.lt.s32.totalorder %s4381_s27, %s4381_s27 }
  0xb4   : > { %p4384_p4 = pnand %p4382_p0, %p5492_p7  ;;  %p4391_p11 = por %p4390_p3, %p4389_p10 }
  0xb6   : > { %p4385_p8 = pneg %p4384_p4 }
  0xb8   : > { %p4392_p6 = pnand %p4391_p11, %p4385_p8 }
  0xba   : > { %4395 = shalt.err (!%p4392_p6)
}
  0xbb   : > { %s5453_s14 = smov 64   ;;  %s5455_s15 = smov 4  }
  0xbc   : > { %p5493_p5 = scmp.ne.s32.totalorder %s5479_s7, 0  ;;  %s4609_s22 = smov [#allocation12]  }
  0xbd   : > { %s643_s16 = sshll.u32 %s4609_s22, 4  ;;  %s4610_s20 = smov [#allocation15]   ;;  %s644_s16 = int_to_ptr.vmem [resolvable:$true] %s643_s16 }
  0xbe   : > { %3892 = dma.hbm_to_vmem [thread:$0]  (!%p5493_p5), %s5491_s28, 1024, %s606_s0, [#allocation8], %s5453_s14, %s5453_s14, %s5455_s15  }
  0xbf   : > { %s678_s1 = sshll.u32 %s4610_s20, 4  ;;  %s4396_s27 = scalar_lea.hbm %s5415_s12, 4096  ;;  %s4956_s1 = int_to_ptr.vmem [resolvable:$true] %s678_s1 }
  0xc0   : > { %p4397_p6 = scmp.ne.s32.totalorder %s5415_s12, %s4396_s27  ;;  %p4403_p12 = scmp.lt.u32.totalorder %s4396_s27, %s5415_s12 }
  0xc2   : > { %p4399_p2 = pnand %p4397_p6, %p5492_p7 }
  0xc4   : > { %p4400_p1 = pneg %p4399_p2 }
  0xc6   : > { %p4405_p13 = pnand %p4403_p12, %p4400_p1 }
  0xc8   : > { %4408 = shalt.err (!%p4405_p13)
}
  0xc9   : > { %s4409_s18 = scalar_lea.vmem %s644_s16, 4096  ;;  %p4417_p10 = scmp.lt.s32.totalorder %s644_s16, %s644_s16 }
  0xca   : > { %p4410_p0 = scmp.ne.s32.totalorder %s644_s16, %s4409_s18  ;;  %p4418_p3 = scmp.lt.s32.totalorder %s4409_s18, %s4409_s18 }
  0xcc   : > { %p4412_p4 = pnand %p4410_p0, %p5492_p7  ;;  %p4419_p11 = por %p4418_p3, %p4417_p10 }
  0xce   : > { %p4413_p8 = pneg %p4412_p4 }
  0xd0   : > { %p4420_p9 = pnand %p4419_p11, %p4413_p8 }
  0xd2   : > { %4423 = shalt.err (!%p4420_p9)
}
  0xd3   : > { %3898 = dma.hbm_to_vmem [thread:$0]  (!%p5493_p5), %s5415_s12, 4096, %s644_s16, [#allocation11], %s5453_s14, %s5453_s14, %s5455_s15  }
  0xd4   : > { %s4424_s13 = scalar_lea.hbm %s5420_s17, 2048 }
  0xd5   : > { %p4425_p6 = scmp.ne.s32.totalorder %s5420_s17, %s4424_s13  ;;  %p4431_p1 = scmp.lt.u32.totalorder %s4424_s13, %s5420_s17 }
  0xd7   : > { %p4427_p9 = pnand %p4425_p6, %p5492_p7 }
  0xd9   : > { %p4428_p2 = pneg %p4427_p9 }
  0xdb   : > { %p4433_p12 = pnand %p4431_p1, %p4428_p2 }
  0xdd   : > { %4436 = shalt.err (!%p4433_p12)
}
  0xde   : > { %s4437_s16 = scalar_lea.vmem %s4956_s1, 2048  ;;  %p4445_p8 = scmp.lt.s32.totalorder %s4956_s1, %s4956_s1 }
  0xdf   : > { %p4438_p13 = scmp.ne.s32.totalorder %s4956_s1, %s4437_s16  ;;  %p4446_p10 = scmp.lt.s32.totalorder %s4437_s16, %s4437_s16 }
  0xe1   : > { %p4440_p0 = pnand %p4438_p13, %p5492_p7  ;;  %p4447_p3 = por %p4446_p10, %p4445_p8 }
  0xe3   : > { %p4441_p4 = pneg %p4440_p0 }
  0xe5   : > { %p4448_p11 = pnand %p4447_p3, %p4441_p4 }
  0xe7   : > { %4451 = shalt.err (!%p4448_p11)
}
  0xe8   : > { %s5494_s18 = smov 8   ;;  %s5495_s9 = smov 128  }
  0xe9   : > { %3904 = dma.hbm_to_vmem [thread:$0]  (!%p5493_p5), %s5420_s17, 2048, %s4956_s1, [#allocation14], %s5495_s9, %s5495_s9, %s5494_s18  }
  0xea   : > { %s4611_s20 = smov [#allocation16]   ;;  %s3715_s23 = sshll.u32 %s4594_s25, 7 }
  0xeb   : > { %s694_s13 = sshll.u32 %s4611_s20, 4  ;;  %s4452_s0 = scalar_lea.hbm %s5422_s19, 4096  ;;  %s695_s13 = int_to_ptr.vmem [resolvable:$true] %s694_s13 }
  0xec   : > { %p4453_p6 = scmp.ne.s32.totalorder %s5422_s19, %s4452_s0  ;;  %p4459_p1 = scmp.lt.u32.totalorder %s4452_s0, %s5422_s19 }
  0xee   : > { %p4455_p9 = pnand %p4453_p6, %p5492_p7 }
  0xf0   : > { %p4456_p2 = pneg %p4455_p9 }
  0xf2   : > { %p4461_p12 = pnand %p4459_p1, %p4456_p2 }
  0xf4   : > { %4464 = shalt.err (!%p4461_p12)
}
  0xf5   : > { %s4465_s1 = scalar_lea.vmem %s695_s13, 4096  ;;  %p4473_p8 = scmp.lt.s32.totalorder %s695_s13, %s695_s13 }
  0xf6   : > { %p4466_p13 = scmp.ne.s32.totalorder %s695_s13, %s4465_s1  ;;  %p4474_p10 = scmp.lt.s32.totalorder %s4465_s1, %s4465_s1 }
  0xf8   : > { %p4468_p0 = pnand %p4466_p13, %p5492_p7  ;;  %p4475_p3 = por %p4474_p10, %p4473_p8 }
  0xfa   : > { %p4469_p4 = pneg %p4468_p0 }
  0xfc   : > { %p4476_p11 = pnand %p4475_p3, %p4469_p4 }
  0xfe   : > { %4479 = shalt.err (!%p4476_p11)
}
  0xff   : > { %3907 = dma.hbm_to_vmem [thread:$0]  (!%p5493_p5), %s5422_s19, 4096, %s695_s13, [#allocation17], %s5495_s9, %s5495_s9, %s5494_s18  }
 0x100   : > { %s5496_s22 = sld [smem:[#allocation27_spill]]  ;;  %s5497_s27 = sshll.u32 %s4879_s29, 3 }
 0x101   : > { %s721_s7 = scalar_lea.vmem [#allocation2], %s5497_s27  ;;  %s5498_s11 = sld [smem:[#allocation30_spill]] }
 0x102   : > { %s728_s24 = sshll.u32 %s721_s7, 4  ;;  %s718_s18 = scalar_lea.sflag [#allocation3], %s4879_s29  ;;  %s5034_s24 = int_to_ptr.vmem [resolvable:$true] %s728_s24 }
 0x103   : > { %p5499_p5 = scmp.ne.s32.totalorder %s5490_s4, 0 }
 0x106   : > { %s5030_s20 = scalar_lea.hbm %s5496_s22, %s3715_s23  ;;  %s4485_s14 = scalar_lea.hbm %s5496_s22, 256 }
 0x107   : > { %s5039_s1 = scalar_lea.hbm %s5498_s11, %s3715_s23  ;;  %s4480_s9 = scalar_lea.hbm %s5030_s20, 128 }
 0x108   : > { %p4481_p7 = scmp.ne.s32.totalorder %s5030_s20, %s4480_s9  ;;  %p4486_p2 = scmp.lt.u32.totalorder %s5030_s20, %s5496_s22 }
 0x109   : > { %p4487_p1 = scmp.lt.u32.totalorder %s4485_s14, %s4480_s9  ;;  %p4489_p13 = scmp.lt.u32.totalorder %s4480_s9, %s5030_s20 }
 0x10a   : > { %p4483_p6 = pnand %p4481_p7, %p5499_p5 }
 0x10b   : > { %p4488_p12 = por %p4487_p1, %p4486_p2 }
 0x10c   : > { %p4484_p9 = pneg %p4483_p6 }
 0x10d   : > { %p4490_p0 = por %p4489_p13, %p4488_p12 }
 0x10f   : > { %p4491_p4 = pnand %p4490_p0, %p4484_p9 }
 0x111   : > { %4494 = shalt.err (!%p4491_p4)
}
 0x112   : > { %s4495_s23 = scalar_lea.vmem %s5034_s24, 128  ;;  %s4612_s27 = smov [#allocation2]  }
 0x113   : > { %p4496_p8 = scmp.ne.s32.totalorder %s5034_s24, %s4495_s23  ;;  %s4500_s7 = sshll.u32 %s4612_s27, 4  ;;  %s4501_s7 = int_to_ptr.vmem [resolvable:$false] %s4500_s7 }
 0x114   : > { %s4502_s0 = scalar_lea.vmem %s4501_s7, 256  ;;  %p4503_p11 = scmp.lt.s32.totalorder %s5034_s24, %s4501_s7 }
 0x115   : > { %p4498_p10 = pnand %p4496_p8, %p5499_p5  ;;  %p4504_p7 = scmp.lt.s32.totalorder %s4502_s0, %s4495_s23 }
 0x117   : > { %p4499_p3 = pneg %p4498_p10  ;;  %p4505_p6 = por %p4504_p7, %p4503_p11 }
 0x119   : > { %p4506_p2 = pnand %p4505_p6, %p4499_p3 }
 0x11b   : > { %4509 = shalt.err (!%p4506_p2)
}
 0x11c   : > { %p5500_p9 = scmp.ne.s32.totalorder %s5488_s21, 0  ;;  %s5501_s16 = smov 4  }
 0x11d   : > { %s5502_s9 = smov 64   ;;  %s4510_s13 = scalar_lea.hbm %s5039_s1, 128 }
 0x11e   : > { %3911 = dma.hbm_to_vmem [thread:$0]  (!%p5500_p9), %s5030_s20, 128, %s5034_s24, %s718_s18, %s5502_s9, %s5502_s9, %s5501_s16  }
 0x11f   : > { %p4511_p1 = scmp.ne.s32.totalorder %s5039_s1, %s4510_s13  ;;  %s4515_s6 = scalar_lea.hbm %s5498_s11, 256 }
 0x120   : > { %p4516_p0 = scmp.lt.u32.totalorder %s5039_s1, %s5498_s11  ;;  %p4517_p4 = scmp.lt.u32.totalorder %s4515_s6, %s4510_s13 }
 0x121   : > { %p4513_p12 = pnand %p4511_p1, %p5499_p5  ;;  %p4519_p10 = scmp.lt.u32.totalorder %s4510_s13, %s5039_s1 }
 0x122   : > { %p4518_p8 = por %p4517_p4, %p4516_p0 }
 0x123   : > { %p4514_p13 = pneg %p4513_p12 }
 0x124   : > { %p4520_p3 = por %p4519_p10, %p4518_p8 }
 0x126   : > { %p4521_p11 = pnand %p4520_p3, %p4514_p13 }
 0x128   : > { %4524 = shalt.err (!%p4521_p11)
}
 0x129   : > { %s4525_s29 = scalar_lea.vmem %s4933_s5, 128  ;;  %s4613_s20 = smov [#allocation6]  }
 0x12a   : > { %p4526_p7 = scmp.ne.s32.totalorder %s4933_s5, %s4525_s29  ;;  %s4530_s24 = sshll.u32 %s4613_s20, 4  ;;  %s4531_s24 = int_to_ptr.vmem [resolvable:$false] %s4530_s24 }
 0x12b   : > { %s4532_s18 = scalar_lea.vmem %s4531_s24, 256  ;;  %p4533_p1 = scmp.lt.s32.totalorder %s4933_s5, %s4531_s24 }
 0x12c   : > { %p4528_p6 = pnand %p4526_p7, %p5499_p5  ;;  %p4534_p12 = scmp.lt.s32.totalorder %s4532_s18, %s4525_s29 }
 0x12e   : > { %p4529_p2 = pneg %p4528_p6  ;;  %p4535_p0 = por %p4534_p12, %p4533_p1 }
 0x130   : > { %p4536_p4 = pnand %p4535_p0, %p4529_p2 }
 0x132   : > { %4539 = shalt.err (!%p4536_p4)
}
 0x133   : > { %3917 = dma.hbm_to_vmem [thread:$0]  (!%p5500_p9), %s5039_s1, 128, %s4933_s5, %s4901_s10, %s5502_s9, %s5502_s9, %s5501_s16  }
 0x134   : > { %p5503_p5 = scmp.ne.s32.totalorder %s5478_s2, 0 }
 0x135   : > { %s5096_s4 = sand.u32 (!%p5503_p5), 1, %s4586_s30   ;;  %p5504_p13 = scmp.ne.s32.totalorder (!%p5503_p5), %s5487_s3, 0 }
 0x136   : > { %784 = sbr.rel (%p5503_p5) target bundleno = 3725 (0xe8d), region = 112  ;;  %s3529_s27 = sshll.u32 (!%p5503_p5), %s5096_s4, 3 }
 0x137   : > { %s787_s7 = scalar_lea.sflag (!%p5503_p5), [#allocation3], %s5096_s4  ;;  %s5100_s0 = scalar_lea.vmem (!%p5503_p5), [#allocation2], %s3529_s27 }
 0x13d   : > { %4557 = dma.done.wait (%p5504_p13), %s787_s7, 128  }
 0x13e   : > { %4559 = vsyncadd (%p5504_p13), %s787_s7, 4294967168  ;;  %s795_s10 = sand.u32 1, %s4760_s26   ;;  %s798_s5 = scalar_lea.vmem [#allocation4], %s5096_s4 }
 0x13f   : > { %s796_s2 = scalar_lea.sflag [#allocation5], %s795_s10 }
 0x140   : > { %4561 = dma.done.wait (%p5504_p13), %s796_s2, 144  }
 0x141   : > { %4563 = vsyncadd (%p5504_p13), %s796_s2, 4294967152  ;;  %s5112_s21 = scalar_lea.vmem [#allocation6], %s3529_s27  ;;  %p5505_p9 = scmp.eq.s32.totalorder %s4760_s26, 0 }
 0x143   : > { %4565 = dma.done.wait (%p5505_p9), [#allocation8], 4096   ;;  %p5506_p8 = pmov %p5505_p9 }
 0x145   : > { %4567 = vsyncadd (%p5506_p8), [#allocation8], 4294963200  ;;  %p5507_p10 = pmov %p5506_p8 }
 0x146   : > { %p5508_p3 = pmov %p5506_p8 }
 0x147   : > { %4569 = dma.done.wait (%p5507_p10), [#allocation11], 8192  }
 0x148   : > { %4571 = vsyncadd (%p5508_p3), [#allocation11], 4294959104  ;;  %p5509_p11 = pmov %p5508_p3 }
 0x149   : > { %p5510_p7 = pmov %p5508_p3 }
 0x14a   : > { %4573 = dma.done.wait (%p5509_p11), [#allocation14], 4096  }
 0x14b   : > { %4575 = vsyncadd (%p5510_p7), [#allocation14], 4294963200  ;;  %p5511_p6 = pmov %p5508_p3 }
 0x14c   : > { %p5512_p2 = pmov %p5508_p3 }
 0x14d   : > { %4577 = dma.done.wait (%p5511_p6), [#allocation17], 4096  }
 0x14e   : > { %4579 = vsyncadd (%p5512_p2), [#allocation17], 4294963200  ;;  %v4614_v0 = vmov 0   ;;  %v3987_v1 = vld [vmem:[#allocation7 + $0x4] ss:$12 sps:$4 sm:$0xff]   ;;  %v4615_v18 = vmov 0.0   ;;  %v957_v19 = vlaneseq }
 0x14f   : > { %1138 = vmatprep.mubr.bf16.mxu0 %v4614_v0  ;;  %3986 = vset.pattern.permute.xlu0 %v4614_v0  ;;  %v3989_v2 = vld [vmem:[#allocation7] ss:$12 sps:$4 sm:$0xff]   ;;  %v3990_v3 = vld [vmem:[#allocation7 + $0x1c] ss:$12 sps:$4 sm:$0xff]   ;;  %v3992_v4 = vld [vmem:[#allocation7 + $0x18] ss:$12 sps:$4 sm:$0xff]  }
 0x150   : > { %3985 = vset.pattern.permute.xlu1 %v4614_v0  ;;  %1106 = vmatprep.subr.bf16.mxu0 %v3987_v1  ;;  %v3993_v5 = vld [vmem:[#allocation7 + $0x34] ss:$12 sps:$4 sm:$0xff]   ;;  %v3995_v6 = vld [vmem:[#allocation7 + $0x30] ss:$12 sps:$4 sm:$0xff]   ;;  %v3996_v7 = vld [vmem:[#allocation7 + $0x4c] ss:$12 sps:$4 sm:$0xff]  }
 0x151   : > { %1107 = vmatpush1.bf16.msra.mxu0 %v3989_v2  ;;  %v3998_v8 = vld [vmem:[#allocation7 + $0x48] ss:$12 sps:$4 sm:$0xff]   ;;  %v3999_v9 = vld [vmem:[#allocation7 + $0x64] ss:$12 sps:$4 sm:$0xff]   ;;  %v4001_v10 = vld [vmem:[#allocation7 + $0x60] ss:$12 sps:$4 sm:$0xff]   ;;  %3808 = vmatprep.subr.bf16.mxu1 %v4615_v18 }
 0x152   : > { %1108 = vmatprep.subr.bf16.mxu0 %v3990_v3  ;;  %v4002_v11 = vld [vmem:[#allocation7 + $0x7c] ss:$12 sps:$4 sm:$0xff]   ;;  %v4004_v12 = vld [vmem:[#allocation7 + $0x78] ss:$12 sps:$4 sm:$0xff]   ;;  %v4005_v13 = vld [vmem:[#allocation7 + $0x94] ss:$12 sps:$4 sm:$0xff]  }
 0x153   : > { %v4007_v14 = vld [vmem:[#allocation7 + $0x90] ss:$12 sps:$4 sm:$0xff]   ;;  %v4008_v15 = vld [vmem:[#allocation7 + $0xac] ss:$12 sps:$4 sm:$0xff]   ;;  %v4010_v16 = vld [vmem:[#allocation7 + $0xa8] ss:$12 sps:$4 sm:$0xff]  }
 0x154   : > { %v5134_v17 = vld [vmem:[%s5100_s0] sm:$0xff]   ;;  %vm4616_vm0 = vmmov 0   ;;  %v5144_v20 = vshrl.u32 %v957_v19, 7  ;;  %s5513_s16 = sld [smem:[#allocation32_spill]]  ;;  %vm1240_vm1 = vcmask 130048   ;;  %s5514_s25 = sld [smem:[#allocation34_spill]] }
 0x155   : > { %1109 = vmatpush1.bf16.msra.mxu0 %v3992_v4  ;;  %3810 = vmatprep.mubr.msk.bf16.mxu1 %vm4616_vm0, %v4615_v18  ;;  %v4012_v36 = vld [vmem:[#allocation7 + $0x8] ss:$12 sps:$4 sm:$0xff]   ;;  %v4013_v37 = vld [vmem:[#allocation7 + $0x20] ss:$12 sps:$4 sm:$0xff]   ;;  %v4014_v38 = vld [vmem:[#allocation7 + $0x38] ss:$12 sps:$4 sm:$0xff]  }
 0x156   : > { %1110 = vmatprep.subr.bf16.mxu0 %v3993_v5  ;;  %v5147_v21 = vsub.s32 0, %v5144_v20  ;;  %v5155_v23 = vsub.s32 1, %v5144_v20  ;;  %v4015_v39 = vld [vmem:[#allocation7 + $0x50] ss:$12 sps:$4 sm:$0xff]   ;;  %v4016_v40 = vld [vmem:[#allocation7 + $0x68] ss:$12 sps:$4 sm:$0xff]  }
 0x157   : > { %v4017_v41 = vld [vmem:[#allocation7 + $0x80] ss:$12 sps:$4 sm:$0xff]   ;;  %v4018_v42 = vld [vmem:[#allocation7 + $0x98] ss:$12 sps:$4 sm:$0xff]   ;;  %v4019_v43 = vld [vmem:[#allocation7 + $0xb0] ss:$12 sps:$4 sm:$0xff]  }
 0x158   : > { %v3565_v44 = vld [vmem:[%s798_s5] ss:$0 sm:$0xff]  ;;  %v967_v63 = vsub.s32 2, %v5144_v20  ;;  %s5515_s29 = sld [smem:[#allocation35_spill]]  ;;  %s5516_s18 = sld [smem:[#allocation37_spill]]  ;;  %vm3097_vm2 = vcmask 1041408  }
 0x159   : > { %1111 = vmatpush1.bf16.msra.mxu0 %v3995_v6  ;;  %s5517_s7 = sld [smem:[#allocation38_spill]]  ;;  %s5518_s2 = sld [smem:[#allocation39_spill]]  ;;  %vm3302_vm3 = vcmask 1041409   ;;  %vm3304_vm4 = vcmask 1042434   ;;  %vm3306_vm5 = vcmask 1043459   ;;  %vm3308_vm6 = vcmask 1044484  }
 0x15a   : > { %1112 = vmatprep.subr.bf16.mxu0 %v3996_v7  ;;  %v5152_v22 = vld [vmem:[%s5513_s16] sm:$0x7]  ;;  %p910_p1 = scmp.lt.s32.totalorder %s4760_s26, 1  ;;  %s5519_s1 = sld [smem:[#allocation40_spill]]  ;;  %vm3310_vm7 = vcmask 1045509   ;;  %vm3312_vm8 = vcmask 1046534  }
 0x15b   : > { %v960_v24 = vrot.slane %v5152_v22, %v5147_v21  ;;  %v964_v26 = vrot.slane %v5152_v22, %v5155_v23  ;;  %v968_v3 = vrot.slane %v5152_v22, %v967_v63  ;;  %s5520_s13 = sld [smem:[#allocation29_spill]]  ;;  %s5521_s6 = sld [smem:[#allocation42_spill]]  ;;  %vm3314_vm9 = vcmask 1047559  }
 0x15c   : > { %s5532_s26 = smov (!%p910_p1, %s4760_s26), 1  ;;  %s5525_s5 = sld [smem:[#allocation46_spill]]  ;;  %vm3325_vm10 = vcmask 15360  }
 0x15d   : > { %1113 = vmatpush1.bf16.msra.mxu0 %v3998_v8  ;;  %s3717_s0 = sshll.u32 %s5532_s26, 4 }
 0x15e   : > { %1114 = vmatprep.subr.bf16.mxu0 %v3999_v9  ;;  %v4020_v9 = vld [vmem:[#allocation9] sm:$0xff]  }
 0x161   : > { %1115 = vmatpush1.bf16.msra.mxu0 %v4001_v10  ;;  %v4021_v10 = vld [vmem:[#allocation9 + $0x8] sm:$0xff]  }
 0x162   : > { %1116 = vmatprep.subr.bf16.mxu0 %v4002_v11  ;;  %v4022_v11 = vld [vmem:[#allocation9 + $0x10] sm:$0xff]   ;;  %s917_s3 = scalar_lea.vmem %s5525_s5, %s3717_s0 }
 0x165   : > { %1117 = vmatpush1.bf16.msra.mxu0 %v4004_v12  ;;  %v4023_v12 = vld [vmem:[#allocation9 + $0x18] sm:$0xff]  }
 0x166   : > { %1118 = vmatprep.subr.bf16.mxu0 %v4005_v13  ;;  %v4024_v13 = vld [vmem:[#allocation9 + $0x20] sm:$0xff]  }
 0x169   : > { %1119 = vmatpush1.bf16.msra.mxu0 %v4007_v14  ;;  %v4025_v14 = vld [vmem:[#allocation9 + $0x28] sm:$0xff]  }
 0x16a   : > { %1120 = vmatprep.subr.bf16.mxu0 %v4008_v15  ;;  %v4026_v15 = vld [vmem:[#allocation9 + $0x30] sm:$0xff]  }
 0x16d   : > { %1121 = vmatpush1.bf16.msra.mxu0 %v4010_v16 }
 0x16e   : > { %3788 = vmatprep.subr.bf16.mxu0 %v4615_v18 }
 0x170   : > { %1139 = vmatmul.mubr.bf16.vlgmr.msra.gmra.mrb[0].mxu0 %v5134_v17 }
 0x171   : > { %3804 = vmatprep.mubr.msk.bf16.mxu0 %vm4616_vm0, %v4615_v18  ;;  %3789 = vmatpush3.bf16.msra.mxu0 %v4012_v36  ;;  %v921_v36 = vunpack.c.l.bf16 %v5134_v17 }
 0x172   : > { %3790 = vmatprep.subr.bf16.mxu0 %v4615_v18 }
 0x175   : > { %3791 = vmatpush3.bf16.msra.mxu0 %v4013_v37 }
 0x176   : > { %3792 = vmatprep.subr.bf16.mxu0 %v4615_v18 }
 0x179   : > { %3793 = vmatpush3.bf16.msra.mxu0 %v4014_v38 }
 0x17a   : > { %3794 = vmatprep.subr.bf16.mxu0 %v4615_v18 }
 0x17d   : > { %3795 = vmatpush3.bf16.msra.mxu0 %v4015_v39 }
 0x17e   : > { %3796 = vmatprep.subr.bf16.mxu0 %v4615_v18 }
 0x181   : > { %3797 = vmatpush3.bf16.msra.mxu0 %v4016_v40  ;;  %v922_v40 = vunpack.c.h.bf16 %v5134_v17 }
 0x182   : > { %3798 = vmatprep.subr.bf16.mxu0 %v4615_v18 }
 0x185   : > { %3799 = vmatpush3.bf16.msra.mxu0 %v4017_v41 }
 0x186   : > { %3800 = vmatprep.subr.bf16.mxu0 %v4615_v18 }
 0x189   : > { %3801 = vmatpush3.bf16.msra.mxu0 %v4018_v42 }
 0x18a   : > { %3802 = vmatprep.subr.bf16.mxu0 %v4615_v18 }
 0x18d   : > { %3803 = vmatpush3.bf16.msra.mxu0 %v4019_v43 }
 0x18e   : > { %3820 = vmatprep.subr.bf16.mxu0 %v4615_v18 }
 0x190   : > { %3805 = vmatmul.mubr.bf16.vlgmr.msra.gmra.mrb[4].mxu0 %v5134_v17  ;;  %v4037_v17 = vld [vmem:[#allocation10 + $0x28] ss:$16 sps:$4 sm:$0xff]  }
 0x191   : > { %3836 = vmatprep.mubr.msk.bf16.mxu0 %vm4616_vm0, %v4615_v18  ;;  %3821 = vmatpush3.bf16.msra.mxu0 %v4020_v9  ;;  %v4052_v9 = vld [vmem:[#allocation10 + $0x80] ss:$16 sps:$4 sm:$0xff]  }
 0x192   : > { %3822 = vmatprep.subr.bf16.mxu0 %v4615_v18 }
 0x195   : > { %3823 = vmatpush3.bf16.msra.mxu0 %v4021_v10  ;;  %v4055_v10 = vld [vmem:[#allocation10 + $0x88] ss:$16 sps:$4 sm:$0xff]  }
 0x196   : > { %3824 = vmatprep.subr.bf16.mxu0 %v4615_v18 }
 0x199   : > { %3825 = vmatpush3.bf16.msra.mxu0 %v4022_v11  ;;  %v4060_v11 = vld [vmem:[#allocation10 + $0xa4] ss:$16 sps:$4 sm:$0xff]  }
 0x19a   : > { %3826 = vmatprep.subr.bf16.mxu0 %v4615_v18 }
 0x19d   : > { %3827 = vmatpush3.bf16.msra.mxu0 %v4023_v12  ;;  %v4063_v12 = vld [vmem:[#allocation10 + $0xac] ss:$16 sps:$4 sm:$0xff]  }
 0x19e   : > { %3828 = vmatprep.subr.bf16.mxu0 %v4615_v18 }
 0x1a1   : > { %3829 = vmatpush3.bf16.msra.mxu0 %v4024_v13  ;;  %v4058_v13 = vld [vmem:[#allocation10 + $0xa0] ss:$16 sps:$4 sm:$0xff]  }
 0x1a2   : > { %3830 = vmatprep.subr.bf16.mxu0 %v4615_v18 }
 0x1a5   : > { %3831 = vmatpush3.bf16.msra.mxu0 %v4025_v14  ;;  %v4061_v14 = vld [vmem:[#allocation10 + $0xa8] ss:$16 sps:$4 sm:$0xff]  }
 0x1a6   : > { %3832 = vmatprep.subr.bf16.mxu0 %v4615_v18 }
 0x1a9   : > { %3833 = vmatpush3.bf16.msra.mxu0 %v4026_v15  ;;  %v4066_v15 = vld [vmem:[#allocation10 + $0xc4] ss:$16 sps:$4 sm:$0xff]  }
 0x1aa   : > { %3834 = vmatprep.subr.bf16.mxu0 %v4615_v18 }
 0x243   : > { %v1140_v25 = vpop.f32.mrb[0].mxu0 }
 0x244   : > { %v1142_v27 = vpop.f32.mrb[1].mxu0  ;;  %v1141_v29 = vadd.f32 %v1140_v25, %v960_v24 }
 0x245   : > { %v1144_v28 = vpop.f32.mrb[2].mxu0  ;;  %v1143_v32 = vadd.f32 %v1142_v27, %v964_v26 }
 0x246   : > { %v1145_v30 = vadd.f32 %v1144_v28, %v960_v24  ;;  %v1146_v31 = vpop.f32.mrb[3].mxu0 }
 0x247   : > { %v1147_v33 = vadd.f32 %v1146_v31, %v964_v26 }
 0x248   : > { %v1190_v34 = vpack.c.bf16 %v1145_v30, %v1141_v29  ;;  %v4027_v29 = vld [vmem:[#allocation9 + $0x38] sm:$0xff]  }
 0x249   : > { %v1191_v35 = vpack.c.bf16 %v1147_v33, %v1143_v32  ;;  %3835 = vmatpush3.bf16.msra.mxu0 %v4027_v29 }
 0x24b   : > { %3809 = vmatpush3.bf16.xpose.msra.mxu1 %v1191_v35  ;;  %v3567_v35 = vld [vmem:[%s5514_s25] ss:$0 sm:$0xff]  ;;  %s912_s25 = scalar_lea.vmem %s5520_s13, %s5532_s26 }
 0x24c   : > { %3814 = vmatprep.subr.bf16.mxu1 %v4615_v18 }
 0x252   : > { %3811 = vmatmul.mubr.bf16.vlgmr.msra.gmra.mrb[0].mxu1 %v1190_v34 }
 0x253   : > { %3816 = vmatprep.mubr.msk.bf16.mxu1 %vm4616_vm0, %v4615_v18 }
 0x263   : > { %v1183_v1 = vpop.f32.mrb[4].mxu0 }
 0x264   : > { %v3806_v2 = vpop.f32.mrb[5].mxu0  ;;  %v1184_v6 = vadd.f32 %v1183_v1, %v968_v3  ;;  %v4040_v1 = vld [vmem:[#allocation10 + $0x40] ss:$16 sps:$4 sm:$0xff]  }
 0x265   : > { %v1186_v4 = vpop.f32.mrb[6].mxu0  ;;  %v4043_v2 = vld [vmem:[#allocation10 + $0x48] ss:$16 sps:$4 sm:$0xff]  }
 0x266   : > { %v3807_v5 = vpop.f32.mrb[7].mxu0  ;;  %v1187_v7 = vadd.f32 %v1186_v4, %v968_v3  ;;  %v4048_v3 = vld [vmem:[#allocation10 + $0x64] ss:$16 sps:$4 sm:$0xff]   ;;  %v4051_v4 = vld [vmem:[#allocation10 + $0x6c] ss:$16 sps:$4 sm:$0xff]  }
 0x267   : > { %v4046_v5 = vld [vmem:[#allocation10 + $0x60] ss:$16 sps:$4 sm:$0xff]  }
 0x268   : > { %v1264_v8 = vpack.c.bf16 %v1187_v7, %v1184_v6  ;;  %v4049_v6 = vld [vmem:[#allocation10 + $0x68] ss:$16 sps:$4 sm:$0xff]   ;;  %v4054_v7 = vld [vmem:[#allocation10 + $0x84] ss:$16 sps:$4 sm:$0xff]  }
 0x26a   : > { %3815 = vmatpush3.bf16.msra.mxu1 %v1264_v8  ;;  %v4057_v8 = vld [vmem:[#allocation10 + $0x8c] ss:$16 sps:$4 sm:$0xff]  }
 0x325   : > { %v1233_v45 = vpop.f32.mrb[0].mxu1 }
 0x326   : > { %v1234_v46 = vadd.f32 %v3565_v44, %v1233_v45  ;;  %v3812_v47 = vpop.f32.mrb[1].mxu1 }
 0x327   : > { %v1236_v48 = vpop.f32.mrb[2].mxu1  ;;  %v4030_v47 = vld [vmem:[#allocation10 + $0x4] ss:$16 sps:$4 sm:$0xff]  }
 0x328   : > { %v1237_v49 = vadd.f32 %v3565_v44, %v1236_v48  ;;  %v3813_v50 = vpop.f32.mrb[3].mxu1  ;;  %v1241_v51 = vsel %vm1240_vm1, %v1234_v46, -inf  ;;  %v4031_v48 = vld [vmem:[#allocation10 + $0x8] ss:$16 sps:$4 sm:$0xff]   ;;  %1680 = vmatprep.subr.bf16.mxu1 %v4030_v47  ;;  %v4077_v47 = vld [vmem:[#allocation12 + $0xc0] sm:$0xff]  }
 0x329   : > { %1242 = vmax.xlane.f32.xlu0 %v1241_v51  ;;  %v4036_v50 = vld [vmem:[#allocation10 + $0x24] ss:$16 sps:$4 sm:$0xff]   ;;  %v4039_v51 = vld [vmem:[#allocation10 + $0x2c] ss:$16 sps:$4 sm:$0xff]  }
 0x32a   : > { %v1244_v52 = vsel %vm1240_vm1, %v1237_v49, -inf }
 0x32d   : > { %1245 = vmax.xlane.f32.xlu0 %v1244_v52  ;;  %v4034_v52 = vld [vmem:[#allocation10 + $0x20] ss:$16 sps:$4 sm:$0xff]  }
 0x3b6   : > { %v1243_v53 = vpop.xlane.xlu0 %1242 }
 0x3b7   : > { %v1247_v54 = vsub.f32 %v1234_v46, %v1243_v53  ;;  %v4028_v46 = vld [vmem:[#allocation10] ss:$16 sps:$4 sm:$0xff]  }
 0x3b9   : > { %v1249_v55 = vmul.f32 1.442695, %v1247_v54 }
 0x3ba   : > { %v1246_v56 = vpop.xlane.xlu0 %1245 }
 0x3bb   : > { %4206 = vpow2.f32 %v1249_v55  ;;  %v1248_v57 = vsub.f32 %v1237_v49, %v1246_v56  ;;  %v4033_v49 = vld [vmem:[#allocation10 + $0xc] ss:$16 sps:$4 sm:$0xff]  }
 0x3bc   : > { %1723 = vmatprep.subr.bf16.mxu0 %v4033_v49  ;;  %v4079_v49 = vld [vmem:[#allocation12 + $0x80] sm:$0xff]  }
 0x3bd   : > { %v1251_v58 = vmul.f32 1.442695, %v1248_v57 }
 0x3bf   : > { %4208 = vpow2.f32 %v1251_v58 }
 0x3c5   : > { %v4207_v59 = vpop.eup %4206 }
 0x3c6   : > { %v1253_v60 = vsel %vm1240_vm1, %v4207_v59, 0.0 }
 0x3c7   : > { %1254 = vadd.xlane.f32.xlu1 %v1253_v60 }
 0x3c9   : > { %v4209_v61 = vpop.eup %4208 }
 0x3ca   : > { %v1256_v62 = vsel %vm1240_vm1, %v4209_v61, 0.0 }
 0x3cb   : > { %1257 = vadd.xlane.f32.xlu1 %v1256_v62  ;;  %v4045_v62 = vld [vmem:[#allocation10 + $0x4c] ss:$16 sps:$4 sm:$0xff]  }
 0x454   : > { %v1255_v16 = vpop.xlane.xlu1 %1254 }
 0x455   : > { %4210 = vrcp.f32 %v1255_v16  ;;  %v4069_v16 = vld [vmem:[#allocation10 + $0xcc] ss:$16 sps:$4 sm:$0xff]  }
 0x458   : > { %v1258_v22 = vpop.xlane.xlu1 %1257 }
 0x459   : > { %4212 = vrcp.f32 %v1258_v22  ;;  %v4064_v22 = vld [vmem:[#allocation10 + $0xc0] ss:$16 sps:$4 sm:$0xff]  }
 0x45f   : > { %v4211_v24 = vpop.eup %4210 }
 0x460   : > { %v1261_v26 = vmul.f32 %v4211_v24, %v4207_v59  ;;  %v4067_v24 = vld [vmem:[#allocation10 + $0xc8] ss:$16 sps:$4 sm:$0xff]  }
 0x463   : > { %v4213_v25 = vpop.eup %4212 }
 0x464   : > { %v1262_v27 = vmul.f32 %v4213_v25, %v4209_v61  ;;  %v4042_v61 = vld [vmem:[#allocation10 + $0x44] ss:$16 sps:$4 sm:$0xff]  }
 0x465   : > { %v4072_v25 = vld [vmem:[#allocation10 + $0xe4] ss:$16 sps:$4 sm:$0xff]  }
 0x466   : > { %v1263_v28 = vpack.c.bf16 %v1262_v27, %v1261_v26  ;;  %v4070_v26 = vld [vmem:[#allocation10 + $0xe0] ss:$16 sps:$4 sm:$0xff]   ;;  %v4073_v27 = vld [vmem:[#allocation10 + $0xe8] ss:$16 sps:$4 sm:$0xff]  }
 0x468   : > { %3817 = vmatmul.mubr.msk.bf16.vlgmr.msra.gmra.mrb[4].mxu1 %vm1240_vm1, %v1263_v28  ;;  %v4075_v28 = vld [vmem:[#allocation10 + $0xec] ss:$16 sps:$4 sm:$0xff]  }
 0x469   : > { %1712 = vmatprep.mubr.bf16.mxu1 %v4614_v0  ;;  %1681 = vmatpush1.bf16.msra.mxu1 %v4028_v46  ;;  %v4076_v46 = vld [vmem:[#allocation12 + $0x40] sm:$0xff]  }
 0x46a   : > { %1682 = vmatprep.subr.bf16.mxu1 %v4036_v50  ;;  %v4080_v50 = vld [vmem:[#allocation12 + $0x48] sm:$0xff]  }
 0x46d   : > { %1683 = vmatpush1.bf16.msra.mxu1 %v4034_v52  ;;  %v4082_v52 = vld [vmem:[#allocation12 + $0x8] sm:$0xff]  }
 0x46e   : > { %1684 = vmatprep.subr.bf16.mxu1 %v4042_v61  ;;  %v4092_v61 = vld [vmem:[#allocation12 + $0x60] sm:$0xff]  }
 0x471   : > { %1685 = vmatpush1.bf16.msra.mxu1 %v4040_v1  ;;  %v4094_v1 = vld [vmem:[#allocation12 + $0x20] sm:$0xff]  }
 0x472   : > { %1686 = vmatprep.subr.bf16.mxu1 %v4048_v3  ;;  %v4096_v3 = vld [vmem:[#allocation12 + $0x68] sm:$0xff]  }
 0x475   : > { %1687 = vmatpush1.bf16.msra.mxu1 %v4046_v5  ;;  %v4098_v5 = vld [vmem:[#allocation12 + $0x28] sm:$0xff]  }
 0x476   : > { %1688 = vmatprep.subr.bf16.mxu1 %v4054_v7  ;;  %v4100_v7 = vld [vmem:[#allocation12 + $0x70] sm:$0xff]  }
 0x479   : > { %1689 = vmatpush1.bf16.msra.mxu1 %v4052_v9  ;;  %v4102_v9 = vld [vmem:[#allocation12 + $0x30] sm:$0xff]  }
 0x47a   : > { %1690 = vmatprep.subr.bf16.mxu1 %v4060_v11  ;;  %v4104_v11 = vld [vmem:[#allocation12 + $0x78] sm:$0xff]  }
 0x47d   : > { %1691 = vmatpush1.bf16.msra.mxu1 %v4058_v13  ;;  %v4106_v13 = vld [vmem:[#allocation12 + $0x38] sm:$0xff]  }
 0x47e   : > { %1692 = vmatprep.subr.bf16.mxu1 %v4066_v15  ;;  %v1498_v15 = vld [vmem:[%s5516_s18] sm:$0xf]  ;;  %s5523_s18 = sld [smem:[#allocation44_spill]] }
 0x481   : > { %1693 = vmatpush1.bf16.msra.mxu1 %v4064_v22  ;;  %v1503_v22 = vrot.slane %v1498_v15, %v5147_v21 }
 0x482   : > { %1694 = vmatprep.subr.bf16.mxu1 %v4072_v25  ;;  %v1507_v25 = vrot.slane %v1498_v15, %v5155_v23 }
 0x485   : > { %1695 = vmatpush1.bf16.msra.mxu1 %v4070_v26 }
 0x486   : > { %3740 = vmatprep.subr.bf16.mxu1 %v4076_v46 }
 0x53b   : > { %v1302_v30 = vpop.f32.mrb[4].mxu1 }
 0x53c   : > { %v3818_v31 = vpop.f32.mrb[5].mxu1 }
 0x53d   : > { %v1305_v32 = vpop.f32.mrb[6].mxu1 }
 0x53e   : > { %v1309_v33 = vpack.c.bf16 %v1305_v32, %v1302_v30  ;;  %v3819_v34 = vpop.f32.mrb[7].mxu1 }
 0x540   : > { %3837 = vmatmul.mubr.bf16.vlgmr.msra.gmra.mrb[8].mxu0 %v1309_v33 }
 0x541   : > { %1755 = vmatprep.mubr.bf16.mxu0 %v4614_v0  ;;  %1724 = vmatpush1.bf16.msra.mxu0 %v4031_v48  ;;  %v4078_v48 = vld [vmem:[#allocation12] sm:$0xff]  }
 0x542   : > { %1725 = vmatprep.subr.bf16.mxu0 %v4039_v51  ;;  %v4081_v51 = vld [vmem:[#allocation12 + $0xc8] sm:$0xff]  }
 0x545   : > { %1726 = vmatpush1.bf16.msra.mxu0 %v4037_v17  ;;  %v4083_v17 = vld [vmem:[#allocation12 + $0x88] sm:$0xff]  }
 0x546   : > { %1727 = vmatprep.subr.bf16.mxu0 %v4045_v62  ;;  %v4093_v62 = vld [vmem:[#allocation12 + $0xe0] sm:$0xff]  }
 0x549   : > { %1728 = vmatpush1.bf16.msra.mxu0 %v4043_v2  ;;  %v4095_v2 = vld [vmem:[#allocation12 + $0xa0] sm:$0xff]  }
 0x54a   : > { %1729 = vmatprep.subr.bf16.mxu0 %v4051_v4  ;;  %v4097_v4 = vld [vmem:[#allocation12 + $0xe8] sm:$0xff]  }
 0x54d   : > { %1730 = vmatpush1.bf16.msra.mxu0 %v4049_v6  ;;  %v4099_v6 = vld [vmem:[#allocation12 + $0xa8] sm:$0xff]  }
 0x54e   : > { %1731 = vmatprep.subr.bf16.mxu0 %v4057_v8  ;;  %v4101_v8 = vld [vmem:[#allocation12 + $0xf0] sm:$0xff]  }
 0x551   : > { %1732 = vmatpush1.bf16.msra.mxu0 %v4055_v10  ;;  %v4103_v10 = vld [vmem:[#allocation12 + $0xb0] sm:$0xff]  }
 0x552   : > { %1733 = vmatprep.subr.bf16.mxu0 %v4063_v12  ;;  %v4105_v12 = vld [vmem:[#allocation12 + $0xf8] sm:$0xff]  }
 0x555   : > { %1734 = vmatpush1.bf16.msra.mxu0 %v4061_v14  ;;  %v4107_v14 = vld [vmem:[#allocation12 + $0xb8] sm:$0xff]  }
 0x556   : > { %1735 = vmatprep.subr.bf16.mxu0 %v4069_v16  ;;  %v1514_v16 = vsub.s32 3, %v5144_v20 }
 0x558   : > { %v1515_v26 = vrot.slane %v1498_v15, %v1514_v16 }
 0x559   : > { %1736 = vmatpush1.bf16.msra.mxu0 %v4067_v24  ;;  %v1511_v24 = vrot.slane %v1498_v15, %v967_v63 }
 0x55a   : > { %1737 = vmatprep.subr.bf16.mxu0 %v4075_v28 }
 0x55d   : > { %1738 = vmatpush1.bf16.msra.mxu0 %v4073_v27 }
 0x55e   : > { %3762 = vmatprep.subr.bf16.mxu0 %v4077_v47 }
 0x613   : > { %v1415_v37 = vpop.f32.mrb[8].mxu0 }
 0x614   : > { %v1416_v38 = vadd.f32 %v3567_v35, %v1415_v37  ;;  %v3838_v39 = vpop.f32.mrb[9].mxu0 }
 0x615   : > { %v1418_v41 = vpop.f32.mrb[10].mxu0 }
 0x616   : > { %v1419_v42 = vadd.f32 %v3567_v35, %v1418_v41  ;;  %v3839_v43 = vpop.f32.mrb[11].mxu0  ;;  %v1422_v44 = vadd.f32 %v1416_v38, %v921_v36  ;;  %v3576_v36 = vld [vmem:[%s5411_s8] ss:$0 sm:$0xff] }
 0x617   : > { %v3577_v41 = vld [vmem:[%s5515_s29] ss:$0 sm:$0xff]  ;;  %s5522_s29 = sld [smem:[#allocation43_spill]] }
 0x618   : > { %1426 = vadd.xlane.f32.xlu0 %v1422_v44  ;;  %v1423_v45 = vadd.f32 %v1419_v42, %v922_v40 }
 0x61a   : > { %1428 = vadd.xlane.f32.xlu1 %v1423_v45 }
 0x6a5   : > { %v1427_v53 = vpop.xlane.xlu0 %1426 }
 0x6a6   : > { %v1431_v54 = vmul.f32 0.0078125, %v1427_v53  ;;  %v4084_v53 = vld [vmem:[#allocation12 + $0x50] sm:$0xff]  }
 0x6a7   : > { %v1429_v55 = vpop.xlane.xlu1 %1428 }
 0x6a8   : > { %v5200_v56 = vsub.f32 %v1422_v44, %v1431_v54  ;;  %v1432_v57 = vmul.f32 0.0078125, %v1429_v55  ;;  %v4085_v54 = vld [vmem:[#allocation12 + $0xd0] sm:$0xff]  }
 0x6a9   : > { %v4086_v55 = vld [vmem:[#allocation12 + $0x10] sm:$0xff]  }
 0x6aa   : > { %v5202_v58 = vsub.f32 %v1423_v45, %v1432_v57  ;;  %v1435_v59 = vmul.f32 %v5200_v56, %v5200_v56  ;;  %v4088_v57 = vld [vmem:[#allocation12 + $0x58] sm:$0xff]  }
 0x6ac   : > { %1437 = vadd.xlane.f32.xlu0 %v1435_v59  ;;  %v1436_v60 = vmul.f32 %v5202_v58, %v5202_v58  ;;  %v4090_v59 = vld [vmem:[#allocation12 + $0x18] sm:$0xff]  }
 0x6ae   : > { %1439 = vadd.xlane.f32.xlu1 %v1436_v60  ;;  %v4091_v60 = vld [vmem:[#allocation12 + $0x98] sm:$0xff]  }
 0x739   : > { %v1438_v29 = vpop.xlane.xlu0 %1437 }
 0x73a   : > { %v1441_v30 = vmul.f32 0.0078125, %v1438_v29 }
 0x73b   : > { %v1440_v31 = vpop.xlane.xlu1 %1439 }
 0x73c   : > { %v1443_v32 = vadd.f32 1e-05, %v1441_v30  ;;  %v1442_v33 = vmul.f32 0.0078125, %v1440_v31 }
 0x73e   : > { %4214 = vrsqrt.f32 %v1443_v32  ;;  %v1444_v34 = vadd.f32 1e-05, %v1442_v33 }
 0x740   : > { %4216 = vrsqrt.f32 %v1444_v34 }
 0x748   : > { %v4215_v35 = vpop.eup %4214 }
 0x749   : > { %v1447_v37 = vmul.f32 %v4215_v35, %v5200_v56  ;;  %v4087_v56 = vld [vmem:[#allocation12 + $0x90] sm:$0xff]  }
 0x74a   : > { %v4217_v38 = vpop.eup %4216 }
 0x74b   : > { %v1448_v39 = vmul.f32 %v4217_v38, %v5202_v58  ;;  %v1455_v40 = vmul.f32 %v3576_v36, %v1447_v37  ;;  %v4089_v58 = vld [vmem:[#allocation12 + $0xd8] sm:$0xff]  }
 0x74d   : > { %v1456_v42 = vmul.f32 %v3576_v36, %v1448_v39  ;;  %v5216_v43 = vadd.f32 %v3577_v41, %v1455_v40 }
 0x74f   : > { %v5218_v44 = vadd.f32 %v3577_v41, %v1456_v42 }
 0x751   : > { %v1465_v45 = vpack.c.bf16 %v5218_v44, %v5216_v43 }
 0x753   : > { %1713 = vmatmul.mubr.bf16.vlgmr.msra.gmra.mrb[8].mxu1 %v1465_v45  ;;  %1756 = vmatmul.mubr.bf16.vlgmr.msra.gmra.mrb[12].mxu0 %v1465_v45 }
 0x754   : > { %3741 = vmatpush3.bf16.msra.mxu1 %v4078_v48  ;;  %3763 = vmatpush3.bf16.msra.mxu0 %v4079_v49 }
 0x755   : > { %3742 = vmatprep.subr.bf16.mxu1 %v4080_v50  ;;  %3764 = vmatprep.subr.bf16.mxu0 %v4081_v51 }
 0x758   : > { %3743 = vmatpush3.bf16.msra.mxu1 %v4082_v52  ;;  %3765 = vmatpush3.bf16.msra.mxu0 %v4083_v17 }
 0x759   : > { %3744 = vmatprep.subr.bf16.mxu1 %v4084_v53  ;;  %3766 = vmatprep.subr.bf16.mxu0 %v4085_v54 }
 0x75c   : > { %3745 = vmatpush3.bf16.msra.mxu1 %v4086_v55  ;;  %3767 = vmatpush3.bf16.msra.mxu0 %v4087_v56 }
 0x75d   : > { %3746 = vmatprep.subr.bf16.mxu1 %v4088_v57  ;;  %3768 = vmatprep.subr.bf16.mxu0 %v4089_v58 }
 0x760   : > { %3747 = vmatpush3.bf16.msra.mxu1 %v4090_v59  ;;  %3769 = vmatpush3.bf16.msra.mxu0 %v4091_v60 }
 0x761   : > { %3748 = vmatprep.subr.bf16.mxu1 %v4092_v61  ;;  %3770 = vmatprep.subr.bf16.mxu0 %v4093_v62 }
 0x764   : > { %3749 = vmatpush3.bf16.msra.mxu1 %v4094_v1  ;;  %3771 = vmatpush3.bf16.msra.mxu0 %v4095_v2 }
 0x765   : > { %3750 = vmatprep.subr.bf16.mxu1 %v4096_v3  ;;  %3772 = vmatprep.subr.bf16.mxu0 %v4097_v4 }
 0x768   : > { %3751 = vmatpush3.bf16.msra.mxu1 %v4098_v5  ;;  %3773 = vmatpush3.bf16.msra.mxu0 %v4099_v6 }
 0x769   : > { %3752 = vmatprep.subr.bf16.mxu1 %v4100_v7  ;;  %3774 = vmatprep.subr.bf16.mxu0 %v4101_v8 }
 0x76c   : > { %3753 = vmatpush3.bf16.msra.mxu1 %v4102_v9  ;;  %3775 = vmatpush3.bf16.msra.mxu0 %v4103_v10 }
 0x76d   : > { %3754 = vmatprep.subr.bf16.mxu1 %v4104_v11  ;;  %3776 = vmatprep.subr.bf16.mxu0 %v4105_v12 }
 0x770   : > { %3755 = vmatpush3.bf16.msra.mxu1 %v4106_v13  ;;  %3777 = vmatpush3.bf16.msra.mxu0 %v4107_v14 }
 0x771   : > { %3840 = vmatprep.subr.bf16.mxu1 %v4615_v18 }
 0x826   : > { %v1714_v27 = vpop.f32.mrb[8].mxu1  ;;  %v1757_v28 = vpop.f32.mrb[12].mxu0 }
 0x827   : > { %v5231_v29 = vadd.f32 %v1714_v27, %v1503_v22  ;;  %v5233_v30 = vadd.f32 %v1757_v28, %v1511_v24  ;;  %v1716_v31 = vpop.f32.mrb[9].mxu1  ;;  %v1759_v32 = vpop.f32.mrb[13].mxu0 }
 0x828   : > { %v5235_v33 = vadd.f32 %v1716_v31, %v1507_v25  ;;  %v5237_v34 = vadd.f32 %v1759_v32, %v1515_v26  ;;  %v1718_v35 = vpop.f32.mrb[10].mxu1  ;;  %v1761_v36 = vpop.f32.mrb[14].mxu0 }
 0x829   : > { %v1774_v37 = vmul.f32 0.044715, %v5231_v29  ;;  %v1776_v63 = vmul.f32 0.044715, %v5233_v30  ;;  %v1719_v38 = vadd.f32 %v1718_v35, %v1503_v22  ;;  %v1762_v39 = vadd.f32 %v1761_v36, %v1511_v24  ;;  %v1720_v40 = vpop.f32.mrb[11].mxu1  ;;  %v1763_v41 = vpop.f32.mrb[15].mxu0 }
 0x82a   : > { %v1775_v42 = vmul.f32 0.044715, %v5235_v33  ;;  %v1777_v45 = vmul.f32 0.044715, %v5237_v34  ;;  %v5243_v46 = vadd.f32 %v1720_v40, %v1507_v25  ;;  %v5245_v47 = vadd.f32 %v1763_v41, %v1515_v26 }
 0x82b   : > { %v1782_v48 = vmul.f32 %v1774_v37, %v5231_v29  ;;  %v1784_v49 = vmul.f32 %v1776_v63, %v5233_v30  ;;  %v1778_v50 = vmul.f32 0.044715, %v1719_v38  ;;  %v1780_v51 = vmul.f32 0.044715, %v1762_v39 }
 0x82c   : > { %v1783_v52 = vmul.f32 %v1775_v42, %v5235_v33  ;;  %v1785_v17 = vmul.f32 %v1777_v45, %v5237_v34  ;;  %v1779_v53 = vmul.f32 0.044715, %v5243_v46  ;;  %v1781_v54 = vmul.f32 0.044715, %v5245_v47 }
 0x82d   : > { %v1790_v55 = vmul.f32 %v1782_v48, %v5231_v29  ;;  %v1792_v56 = vmul.f32 %v1784_v49, %v5233_v30  ;;  %v1786_v57 = vmul.f32 %v1778_v50, %v1719_v38  ;;  %v1788_v58 = vmul.f32 %v1780_v51, %v1762_v39 }
 0x82e   : > { %v1791_v59 = vmul.f32 %v1783_v52, %v5235_v33  ;;  %v1793_v60 = vmul.f32 %v1785_v17, %v5237_v34  ;;  %v1787_v61 = vmul.f32 %v1779_v53, %v5243_v46  ;;  %v1789_v62 = vmul.f32 %v1781_v54, %v5245_v47 }
 0x82f   : > { %v1798_v1 = vadd.f32 %v1790_v55, %v5231_v29  ;;  %v1800_v2 = vadd.f32 %v1792_v56, %v5233_v30  ;;  %v1794_v3 = vmul.f32 %v1786_v57, %v1719_v38  ;;  %v1796_v4 = vmul.f32 %v1788_v58, %v1762_v39 }
 0x830   : > { %v1795_v5 = vmul.f32 %v1787_v61, %v5243_v46  ;;  %v1797_v6 = vmul.f32 %v1789_v62, %v5245_v47  ;;  %v1799_v11 = vadd.f32 %v1791_v59, %v5235_v33  ;;  %v1801_v15 = vadd.f32 %v1793_v60, %v5237_v34 }
 0x831   : > { %v1806_v7 = vmul.f32 0.7978846, %v1798_v1  ;;  %v1808_v8 = vmul.f32 0.7978846, %v1800_v2  ;;  %v1802_v9 = vadd.f32 %v1794_v3, %v1719_v38  ;;  %v1804_v10 = vadd.f32 %v1796_v4, %v1762_v39 }
 0x832   : > { %v1803_v12 = vadd.f32 %v1795_v5, %v5243_v46  ;;  %v1807_v16 = vmul.f32 0.7978846, %v1799_v11  ;;  %v1805_v24 = vadd.f32 %v1797_v6, %v5245_v47  ;;  %v1809_v25 = vmul.f32 0.7978846, %v1801_v15 }
 0x833   : > { %4218 = vtanh.f32 %v1806_v7  ;;  %v1810_v13 = vmul.f32 0.7978846, %v1802_v9  ;;  %v1812_v14 = vmul.f32 0.7978846, %v1804_v10  ;;  %v1766_v37 = vmul.f32 0.5, %v5231_v29 }
 0x834   : > { %4220 = vtanh.f32 %v1808_v8  ;;  %v1811_v22 = vmul.f32 0.7978846, %v1803_v12  ;;  %v1813_v26 = vmul.f32 0.7978846, %v1805_v24  ;;  %v1770_v63 = vmul.f32 0.5, %v1719_v38 }
 0x835   : > { %4222 = vtanh.f32 %v1810_v13  ;;  %v1768_v42 = vmul.f32 0.5, %v5233_v30  ;;  %v1772_v45 = vmul.f32 0.5, %v1762_v39  ;;  %v1767_v50 = vmul.f32 0.5, %v5235_v33 }
 0x836   : > { %4224 = vtanh.f32 %v1812_v14  ;;  %v1771_v54 = vmul.f32 0.5, %v5243_v46  ;;  %v1769_v38 = vmul.f32 0.5, %v5237_v34  ;;  %v1773_v58 = vmul.f32 0.5, %v5245_v47  ;;  %v3610_v46 = vld [vmem:[%s5517_s7] ss:$0 sm:$0xff]  ;;  %s5524_s7 = sld [smem:[#allocation45_spill]] }
 0x837   : > { %4226 = vtanh.f32 %v1807_v16 }
 0x838   : > { %4228 = vtanh.f32 %v1811_v22 }
 0x839   : > { %4230 = vtanh.f32 %v1809_v25 }
 0x83a   : > { %4232 = vtanh.f32 %v1813_v26 }
 0x83d   : > { %v4219_v27 = vpop.eup %4218 }
 0x83e   : > { %v4221_v28 = vpop.eup %4220  ;;  %v1822_v31 = vadd.f32 1.0, %v4219_v27 }
 0x83f   : > { %v4223_v32 = vpop.eup %4222  ;;  %v1824_v35 = vadd.f32 1.0, %v4221_v28 }
 0x840   : > { %v4225_v36 = vpop.eup %4224  ;;  %v1826_v40 = vadd.f32 1.0, %v4223_v32  ;;  %v1830_v52 = vmul.f32 %v1822_v31, %v1766_v37 }
 0x841   : > { %v4227_v41 = vpop.eup %4226  ;;  %v1828_v48 = vadd.f32 1.0, %v4225_v36  ;;  %v1832_v56 = vmul.f32 %v1824_v35, %v1768_v42  ;;  %v4132_v42 = vld [vmem:[#allocation13 + $0x24] ss:$8 sps:$4 sm:$0xff]  }
 0x842   : > { %v4229_v49 = vpop.eup %4228  ;;  %v1823_v51 = vadd.f32 1.0, %v4227_v41  ;;  %v1834_v17 = vmul.f32 %v1826_v40, %v1770_v63  ;;  %v4118_v63 = vld [vmem:[#allocation13] ss:$8 sps:$4 sm:$0xff]   ;;  %v4120_v40 = vld [vmem:[#allocation13 + $0x4] ss:$8 sps:$4 sm:$0xff]  }
 0x843   : > { %v4231_v53 = vpop.eup %4230  ;;  %v1827_v55 = vadd.f32 1.0, %v4229_v49  ;;  %v1836_v57 = vmul.f32 %v1828_v48, %v1772_v45  ;;  %2568 = vmatprep.subr.bf16.mxu0 %v4120_v40  ;;  %v4124_v41 = vld [vmem:[#allocation13 + $0x10] ss:$8 sps:$4 sm:$0xff]   ;;  %v4138_v48 = vld [vmem:[#allocation13 + $0x34] ss:$8 sps:$4 sm:$0xff]  }
 0x844   : > { %v4233_v29 = vpop.eup %4232  ;;  %v1825_v30 = vadd.f32 1.0, %v4231_v53  ;;  %v1838_v39 = vpack.c.bf16 %v1834_v17, %v1830_v52  ;;  %v1831_v59 = vmul.f32 %v1823_v51, %v1767_v50  ;;  %v4136_v45 = vld [vmem:[#allocation13 + $0x30] ss:$8 sps:$4 sm:$0xff]   ;;  %v4142_v49 = vld [vmem:[#allocation13 + $0x40] ss:$8 sps:$4 sm:$0xff]  }
 0x845   : > { %v1835_v60 = vmul.f32 %v1827_v55, %v1771_v54  ;;  %v1829_v61 = vadd.f32 1.0, %v4233_v29  ;;  %v1840_v33 = vpack.c.bf16 %v1836_v57, %v1832_v56  ;;  %v4144_v50 = vld [vmem:[#allocation13 + $0x44] ss:$8 sps:$4 sm:$0xff]   ;;  %v4148_v51 = vld [vmem:[#allocation13 + $0x50] ss:$8 sps:$4 sm:$0xff]  }
 0x846   : > { %v1833_v1 = vmul.f32 %v1825_v30, %v1769_v38  ;;  %v4150_v52 = vld [vmem:[#allocation13 + $0x54] ss:$8 sps:$4 sm:$0xff]   ;;  %v4165_v40 = vld [vmem:[#allocation16 + $0x24] ss:$8 sps:$4 sm:$0xff]  }
 0x847   : > { %v1839_v62 = vpack.c.bf16 %v1835_v60, %v1831_v59  ;;  %v1837_v2 = vmul.f32 %v1829_v61, %v1773_v58  ;;  %v3643_v38 = vld [vmem:[%s5518_s2] ss:$0 sm:$0xff] }
 0x848   : > { %v3644_v60 = vld [vmem:[%s5519_s1] ss:$0 sm:$0xff] }
 0x849   : > { %2137 = vmatprep.mubr.bf16.mxu1 %v1839_v62  ;;  %v1841_v3 = vpack.c.bf16 %v1837_v2, %v1833_v1  ;;  %v2230_v2 = vld [vmem:[%s912_s25] sm:$0x1] }
 0x84a   : > { %2138 = vmatmul.mubr.bf16.vlgmr.msra.gmra.mrb[12].mxu1 %v1838_v39 }
 0x84b   : > { %2178 = vmatprep.mubr.bf16.mxu0 %v1841_v3  ;;  %3842 = vmatprep.mubr.msk.bf16.mxu1 %vm4616_vm0, %v4615_v18  ;;  %v4111_v3 = vld [vmem:[#allocation15 + $0x4] ss:$8 sps:$4 sm:$0xff]  }
 0x84c   : > { %2179 = vmatmul.mubr.bf16.vlgmr.msra.gmra.mrb[16].mxu0 %v1840_v33 }
 0x84d   : > { %2600 = vmatprep.mubr.bf16.mxu0 %v4614_v0  ;;  %2569 = vmatpush1.bf16.msra.mxu0 %v4118_v63  ;;  %v4160_v63 = vld [vmem:[#allocation16 + $0x10] ss:$8 sps:$4 sm:$0xff]  }
 0x91d   : > { %v3756_v34 = vpop.f32.mrb[12].mxu1 }
 0x91e   : > { %v3757_v47 = vpop.f32.mrb[13].mxu1 }
 0x91f   : > { %v3778_v4 = vpop.f32.mrb[16].mxu0  ;;  %v3758_v5 = vadd.f32 %v3757_v47, %v3756_v34  ;;  %v3759_v6 = vpop.f32.mrb[14].mxu1  ;;  %v4108_v34 = vld [vmem:[%s5112_s21] sm:$0xff]  }
 0x920   : > { %v3779_v7 = vpop.f32.mrb[17].mxu0  ;;  %v3760_v8 = vpop.f32.mrb[15].mxu1  ;;  %v4114_v47 = vld [vmem:[#allocation15 + $0x14] ss:$8 sps:$4 sm:$0xff]  }
 0x921   : > { %v2140_v9 = vadd.f32 %v3758_v5, %v3610_v46  ;;  %v3780_v10 = vadd.f32 %v3779_v7, %v3778_v4  ;;  %v3781_v11 = vpop.f32.mrb[18].mxu0  ;;  %v3761_v12 = vadd.f32 %v3760_v8, %v3759_v6  ;;  %v4112_v4 = vld [vmem:[#allocation15 + $0x10] ss:$8 sps:$4 sm:$0xff]   ;;  %v4117_v5 = vld [vmem:[#allocation15 + $0x24] ss:$8 sps:$4 sm:$0xff]  }
 0x922   : > { %v3782_v13 = vpop.f32.mrb[19].mxu0  ;;  %v4115_v6 = vld [vmem:[#allocation15 + $0x20] ss:$8 sps:$4 sm:$0xff]   ;;  %v4123_v7 = vld [vmem:[#allocation15 + $0x34] ss:$8 sps:$4 sm:$0xff]  }
 0x923   : > { %v2181_v14 = vadd.f32 %v3780_v10, %v2140_v9  ;;  %v2143_v15 = vadd.f32 %v3761_v12, %v3610_v46  ;;  %v3783_v16 = vadd.f32 %v3782_v13, %v3781_v11  ;;  %v4109_v46 = vld [vmem:[#allocation15] ss:$8 sps:$4 sm:$0xff]   ;;  %v4121_v8 = vld [vmem:[#allocation15 + $0x30] ss:$8 sps:$4 sm:$0xff]   ;;  %v4129_v9 = vld [vmem:[#allocation15 + $0x44] ss:$8 sps:$4 sm:$0xff]  }
 0x924   : > { %v4127_v10 = vld [vmem:[#allocation15 + $0x40] ss:$8 sps:$4 sm:$0xff]   ;;  %v4135_v11 = vld [vmem:[#allocation15 + $0x54] ss:$8 sps:$4 sm:$0xff]   ;;  %v4133_v12 = vld [vmem:[#allocation15 + $0x50] ss:$8 sps:$4 sm:$0xff]  }
 0x925   : > { %v2184_v22 = vadd.f32 %v3783_v16, %v2143_v15  ;;  %v2187_v24 = vadd.f32 %v2181_v14, %v5216_v43  ;;  %v4126_v43 = vld [vmem:[#allocation13 + $0x14] ss:$8 sps:$4 sm:$0xff]   ;;  %v4141_v13 = vld [vmem:[#allocation15 + $0x64] ss:$8 sps:$4 sm:$0xff]   ;;  %v4145_v15 = vld [vmem:[#allocation15 + $0x70] ss:$8 sps:$4 sm:$0xff]  }
 0x926   : > { %2570 = vmatprep.subr.bf16.mxu0 %v4126_v43  ;;  %v4147_v14 = vld [vmem:[#allocation15 + $0x74] ss:$8 sps:$4 sm:$0xff]   ;;  %v4151_v16 = vld [vmem:[#allocation13 + $0x60] ss:$8 sps:$4 sm:$0xff]  }
 0x927   : > { %2191 = vadd.xlane.f32.xlu0 %v2187_v24  ;;  %v2188_v25 = vadd.f32 %v2184_v22, %v5218_v44  ;;  %2571 = vmatpush1.bf16.msra.mxu0 %v4124_v41  ;;  %v4130_v44 = vld [vmem:[#allocation13 + $0x20] ss:$8 sps:$4 sm:$0xff]   ;;  %v4153_v22 = vld [vmem:[#allocation13 + $0x64] ss:$8 sps:$4 sm:$0xff]  }
 0x928   : > { %2572 = vmatprep.subr.bf16.mxu0 %v4132_v42  ;;  %v4163_v43 = vld [vmem:[#allocation16 + $0x20] ss:$8 sps:$4 sm:$0xff]   ;;  %v4168_v42 = vld [vmem:[#allocation16 + $0x34] ss:$8 sps:$4 sm:$0xff]  }
 0x929   : > { %2193 = vadd.xlane.f32.xlu1 %v2188_v25 }
 0x92b   : > { %2573 = vmatpush1.bf16.msra.mxu0 %v4130_v44 }
 0x92c   : > { %2574 = vmatprep.subr.bf16.mxu0 %v4138_v48 }
 0x92f   : > { %2575 = vmatpush1.bf16.msra.mxu0 %v4136_v45 }
 0x930   : > { %2576 = vmatprep.subr.bf16.mxu0 %v4144_v50  ;;  %v4166_v50 = vld [vmem:[#allocation16 + $0x30] ss:$8 sps:$4 sm:$0xff]  }
 0x933   : > { %2577 = vmatpush1.bf16.msra.mxu0 %v4142_v49 }
 0x934   : > { %2578 = vmatprep.subr.bf16.mxu0 %v4150_v52  ;;  %v4169_v52 = vld [vmem:[#allocation16 + $0x40] ss:$8 sps:$4 sm:$0xff]  }
 0x937   : > { %2579 = vmatpush1.bf16.msra.mxu0 %v4148_v51  ;;  %v4171_v51 = vld [vmem:[#allocation16 + $0x44] ss:$8 sps:$4 sm:$0xff]  }
 0x938   : > { %2580 = vmatprep.subr.bf16.mxu0 %v4153_v22 }
 0x93b   : > { %2581 = vmatpush1.bf16.msra.mxu0 %v4151_v16 }
 0x9b4   : > { %v2192_v26 = vpop.xlane.xlu0 %2191 }
 0x9b5   : > { %v2195_v27 = vmul.f32 0.0078125, %v2192_v26  ;;  %v4159_v26 = vld [vmem:[#allocation16 + $0x4] ss:$8 sps:$4 sm:$0xff]  }
 0x9b6   : > { %v2194_v28 = vpop.xlane.xlu1 %2193 }
 0x9b7   : > { %v2197_v31 = vsub.f32 %v2187_v24, %v2195_v27  ;;  %v2196_v32 = vmul.f32 0.0078125, %v2194_v28  ;;  %v4154_v24 = vld [vmem:[#allocation13 + $0x70] ss:$8 sps:$4 sm:$0xff]   ;;  %v4157_v28 = vld [vmem:[#allocation16] ss:$8 sps:$4 sm:$0xff]  }
 0x9b9   : > { %v2198_v35 = vsub.f32 %v2188_v25, %v2196_v32  ;;  %v2199_v36 = vmul.f32 %v2197_v31, %v2197_v31  ;;  %v4156_v25 = vld [vmem:[#allocation13 + $0x74] ss:$8 sps:$4 sm:$0xff]  }
 0x9ba   : > { %2582 = vmatprep.subr.bf16.mxu0 %v4156_v25 }
 0x9bb   : > { %2201 = vadd.xlane.f32.xlu0 %v2199_v36  ;;  %v2200_v37 = vmul.f32 %v2198_v35, %v2198_v35  ;;  %2583 = vmatpush1.bf16.msra.mxu0 %v4154_v24 }
 0x9bd   : > { %2203 = vadd.xlane.f32.xlu1 %v2200_v37 }
 0xa48   : > { %v2202_v17 = vpop.xlane.xlu0 %2201 }
 0xa49   : > { %v2205_v53 = vmul.f32 0.0078125, %v2202_v17  ;;  %v4172_v17 = vld [vmem:[#allocation16 + $0x50] ss:$8 sps:$4 sm:$0xff]  }
 0xa4a   : > { %v2204_v54 = vpop.xlane.xlu1 %2203 }
 0xa4b   : > { %v2207_v55 = vadd.f32 1e-05, %v2205_v53  ;;  %v2206_v56 = vmul.f32 0.0078125, %v2204_v54  ;;  %v4174_v53 = vld [vmem:[#allocation16 + $0x54] ss:$8 sps:$4 sm:$0xff]  }
 0xa4c   : > { %v4177_v54 = vld [vmem:[#allocation16 + $0x64] ss:$8 sps:$4 sm:$0xff]  }
 0xa4d   : > { %4234 = vrsqrt.f32 %v2207_v55  ;;  %v2208_v57 = vadd.f32 1e-05, %v2206_v56  ;;  %v4175_v55 = vld [vmem:[#allocation16 + $0x60] ss:$8 sps:$4 sm:$0xff]   ;;  %v4180_v56 = vld [vmem:[#allocation16 + $0x74] ss:$8 sps:$4 sm:$0xff]  }
 0xa4f   : > { %4236 = vrsqrt.f32 %v2208_v57  ;;  %v4178_v57 = vld [vmem:[#allocation16 + $0x70] ss:$8 sps:$4 sm:$0xff]  }
 0xa57   : > { %v4235_v29 = vpop.eup %4234 }
 0xa58   : > { %v2211_v58 = vmul.f32 %v4235_v29, %v2197_v31  ;;  %v4181_v29 = vld [vmem:[#allocation16 + $0x80] ss:$8 sps:$4 sm:$0xff]  }
 0xa59   : > { %v4237_v30 = vpop.eup %4236 }
 0xa5a   : > { %v2212_v39 = vmul.f32 %v4237_v30, %v2198_v35  ;;  %v2219_v59 = vmul.f32 %v3643_v38, %v2211_v58  ;;  %v4162_v35 = vld [vmem:[#allocation16 + $0x14] ss:$8 sps:$4 sm:$0xff]   ;;  %v4184_v30 = vld [vmem:[#allocation16 + $0x90] ss:$8 sps:$4 sm:$0xff]  }
 0xa5b   : > { %v4186_v58 = vld [vmem:[#allocation16 + $0x94] ss:$8 sps:$4 sm:$0xff]  }
 0xa5c   : > { %v2220_v61 = vmul.f32 %v3643_v38, %v2212_v39  ;;  %v2227_v33 = vadd.f32 %v3644_v60, %v2219_v59  ;;  %v4183_v38 = vld [vmem:[#allocation16 + $0x84] ss:$8 sps:$4 sm:$0xff]   ;;  %v4187_v59 = vld [vmem:[#allocation16 + $0xa0] ss:$8 sps:$4 sm:$0xff]  }
 0xa5d   : > { %v4189_v39 = vld [vmem:[#allocation16 + $0xa4] ss:$8 sps:$4 sm:$0xff]  }
 0xa5e   : > { %v2228_v62 = vadd.f32 %v3644_v60, %v2220_v61  ;;  %v4192_v60 = vld [vmem:[#allocation16 + $0xb4] ss:$8 sps:$4 sm:$0xff]   ;;  %v4190_v61 = vld [vmem:[#allocation16 + $0xb0] ss:$8 sps:$4 sm:$0xff]  }
 0xa60   : > { %v2229_v1 = vpack.c.bf16 %v2228_v62, %v2227_v33  ;;  %v4195_v33 = vld [vmem:[#allocation16 + $0xc4] ss:$8 sps:$4 sm:$0xff]   ;;  %v4193_v62 = vld [vmem:[#allocation16 + $0xc0] ss:$8 sps:$4 sm:$0xff]  }
 0xa62   : > { %3841 = vmatpush3.bf16.msra.mxu1 %v2229_v1 }
 0xa63   : > { %3846 = vmatprep.subr.bf16.mxu1 %v4615_v18 }
 0xa65   : > { %3843 = vmatmul.mubr.msk.bf16.vlgmr.msra.gmra.mrb[16].mxu1 %vm1240_vm1, %v2230_v2  ;;  %v4196_v2 = vld [vmem:[#allocation16 + $0xd0] ss:$8 sps:$4 sm:$0xff]  }
 0xa66   : > { %3847 = vmatpush3.bf16.msra.mxu1 %v2229_v1  ;;  %3848 = vmatprep.mubr.msk.bf16.mxu1 %vm4616_vm0, %v4615_v18  ;;  %v4198_v1 = vld [vmem:[#allocation16 + $0xd4] ss:$8 sps:$4 sm:$0xff]  }
 0xa67   : > { %2439 = vmatprep.subr.bf16.mxu1 %v4111_v3  ;;  %v4201_v3 = vld [vmem:[#allocation16 + $0xe4] ss:$8 sps:$4 sm:$0xff]  }
 0xa6d   : > { %3849 = vmatmul.mubr.msk.bf16.vlgmr.msra.gmra.mrb[20].mxu1 %vm1240_vm1, %v4108_v34  ;;  %v4199_v34 = vld [vmem:[#allocation16 + $0xe0] ss:$8 sps:$4 sm:$0xff]  }
 0xa6e   : > { %2440 = vmatpush1.bf16.msra.mxu1 %v4109_v46  ;;  %2471 = vmatprep.mubr.bf16.mxu1 %v4614_v0  ;;  %v4139_v0 = vld [vmem:[#allocation15 + $0x60] ss:$8 sps:$4 sm:$0xff]   ;;  %v4204_v46 = vld [vmem:[#allocation16 + $0xf4] ss:$8 sps:$4 sm:$0xff]  }
 0xa6f   : > { %2441 = vmatprep.subr.bf16.mxu1 %v4114_v47  ;;  %v4202_v47 = vld [vmem:[#allocation16 + $0xf0] ss:$8 sps:$4 sm:$0xff]  }
 0xa72   : > { %2442 = vmatpush1.bf16.msra.mxu1 %v4112_v4 }
 0xa73   : > { %2443 = vmatprep.subr.bf16.mxu1 %v4117_v5 }
 0xa76   : > { %2444 = vmatpush1.bf16.msra.mxu1 %v4115_v6 }
 0xa77   : > { %2445 = vmatprep.subr.bf16.mxu1 %v4123_v7 }
 0xa7a   : > { %2446 = vmatpush1.bf16.msra.mxu1 %v4121_v8  ;;  %v2611_v8 = vld [vmem:[%s5521_s6] sm:$0x3] }
 0xa7b   : > { %2447 = vmatprep.subr.bf16.mxu1 %v4129_v9 }
 0xa7e   : > { %2448 = vmatpush1.bf16.msra.mxu1 %v4127_v10  ;;  %v2616_v10 = vrot.slane %v2611_v8, %v5147_v21 }
 0xa7f   : > { %2449 = vmatprep.subr.bf16.mxu1 %v4135_v11 }
 0xa82   : > { %2450 = vmatpush1.bf16.msra.mxu1 %v4133_v12 }
 0xa83   : > { %2451 = vmatprep.subr.bf16.mxu1 %v4141_v13  ;;  %v2620_v13 = vrot.slane %v2611_v8, %v5155_v23 }
 0xa86   : > { %2452 = vmatpush1.bf16.msra.mxu1 %v4139_v0 }
 0xa87   : > { %2453 = vmatprep.subr.bf16.mxu1 %v4147_v14 }
 0xa8a   : > { %2454 = vmatpush1.bf16.msra.mxu1 %v4145_v15 }
 0xa8b   : > { %2869 = vmatprep.subr.bf16.mxu1 %v4159_v26 }
 0xb38   : > { %v2268_v27 = vpop.f32.mrb[16].mxu1 }
 0xb39   : > { %v2342_v31 = vpack.c.bf16 %v2268_v27, %v2268_v27  ;;  %v3844_v32 = vpop.f32.mrb[17].mxu1 }
 0xb3a   : > { %v2271_v36 = vpop.f32.mrb[18].mxu1 }
 0xb3b   : > { %v3845_v37 = vpop.f32.mrb[19].mxu1  ;;  %2472 = vmatmul.mubr.bf16.vlgmr.msra.gmra.mrb[24].mxu1 %v2342_v31 }
 0xb3c   : > { %2870 = vmatpush1.bf16.msra.mxu1 %v4157_v28 }
 0xb3d   : > { %2871 = vmatprep.subr.bf16.mxu1 %v4162_v35 }
 0xb40   : > { %v2318_v41 = vpop.f32.mrb[20].mxu1  ;;  %2872 = vmatpush1.bf16.msra.mxu1 %v4160_v63 }
 0xb41   : > { %v3850_v44 = vpop.f32.mrb[21].mxu1  ;;  %2873 = vmatprep.subr.bf16.mxu1 %v4165_v40 }
 0xb42   : > { %v2321_v45 = vpop.f32.mrb[22].mxu1 }
 0xb43   : > { %v2325_v48 = vpack.c.bf16 %v2321_v45, %v2318_v41  ;;  %v3851_v49 = vpop.f32.mrb[23].mxu1 }
 0xb44   : > { %2874 = vmatpush1.bf16.msra.mxu1 %v4163_v43 }
 0xb45   : > { %2601 = vmatmul.mubr.bf16.vlgmr.msra.gmra.mrb[20].mxu0 %v2325_v48  ;;  %2875 = vmatprep.subr.bf16.mxu1 %v4168_v42 }
 0xb48   : > { %2876 = vmatpush1.bf16.msra.mxu1 %v4166_v50 }
 0xb49   : > { %2877 = vmatprep.subr.bf16.mxu1 %v4171_v51 }
 0xb4c   : > { %2878 = vmatpush1.bf16.msra.mxu1 %v4169_v52 }
 0xb4d   : > { %2879 = vmatprep.subr.bf16.mxu1 %v4174_v53 }
 0xb50   : > { %2880 = vmatpush1.bf16.msra.mxu1 %v4172_v17 }
 0xb51   : > { %2881 = vmatprep.subr.bf16.mxu1 %v4177_v54 }
 0xb54   : > { %2882 = vmatpush1.bf16.msra.mxu1 %v4175_v55 }
 0xb55   : > { %2883 = vmatprep.subr.bf16.mxu1 %v4180_v56 }
 0xb58   : > { %2884 = vmatpush1.bf16.msra.mxu1 %v4178_v57 }
 0xb59   : > { %2885 = vmatprep.subr.bf16.mxu1 %v4183_v38 }
 0xb5c   : > { %2886 = vmatpush1.bf16.msra.mxu1 %v4181_v29 }
 0xb5d   : > { %2887 = vmatprep.subr.bf16.mxu1 %v4186_v58 }
 0xb60   : > { %2888 = vmatpush1.bf16.msra.mxu1 %v4184_v30 }
 0xb61   : > { %2889 = vmatprep.subr.bf16.mxu1 %v4189_v39 }
 0xb64   : > { %2890 = vmatpush1.bf16.msra.mxu1 %v4187_v59 }
 0xb65   : > { %2891 = vmatprep.subr.bf16.mxu1 %v4192_v60 }
 0xb68   : > { %2892 = vmatpush1.bf16.msra.mxu1 %v4190_v61 }
 0xb69   : > { %2893 = vmatprep.subr.bf16.mxu1 %v4195_v33 }
 0xb6c   : > { %2894 = vmatpush1.bf16.msra.mxu1 %v4193_v62 }
 0xb6d   : > { %2895 = vmatprep.subr.bf16.mxu1 %v4198_v1 }
 0xb70   : > { %2896 = vmatpush1.bf16.msra.mxu1 %v4196_v2 }
 0xb71   : > { %2897 = vmatprep.subr.bf16.mxu1 %v4201_v3 }
 0xb74   : > { %2898 = vmatpush1.bf16.msra.mxu1 %v4199_v34 }
 0xb75   : > { %2899 = vmatprep.subr.bf16.mxu1 %v4204_v46 }
 0xb78   : > { %2900 = vmatpush1.bf16.msra.mxu1 %v4202_v47 }
 0xc0e   : > { %v2473_v4 = vpop.f32.mrb[24].mxu1 }
 0xc0f   : > { %v2475_v5 = vpop.f32.mrb[25].mxu1  ;;  %v2483_v9 = vrot.slane %v2473_v4, %v5147_v21  ;;  %v2697_v4 = vld [vmem:[%s5522_s29] sm:$0x3] }
 0xc10   : > { %v2477_v6 = vpop.f32.mrb[26].mxu1  ;;  %v2487_v11 = vrot.slane %v2475_v5, %v5147_v21  ;;  %v2702_v5 = vrot.slane %v2697_v4, %v5147_v21 }
 0xc11   : > { %v2478_v7 = vpop.f32.mrb[27].mxu1  ;;  %v2706_v6 = vrot.slane %v2697_v4, %v5155_v23 }
 0xc18   : > { %v2602_v12 = vpop.f32.mrb[20].mxu0 }
 0xc19   : > { %v2603_v0 = vadd.f32 %v2602_v12, %v2483_v9  ;;  %v2604_v14 = vpop.f32.mrb[21].mxu0 }
 0xc1a   : > { %v2605_v15 = vadd.f32 %v2604_v14, %v2487_v11  ;;  %v2606_v16 = vpop.f32.mrb[22].mxu0 }
 0xc1b   : > { %v2623_v22 = vadd.f32 %v2616_v10, %v2603_v0  ;;  %v2607_v24 = vadd.f32 %v2606_v16, %v2483_v9  ;;  %v2608_v25 = vpop.f32.mrb[23].mxu0 }
 0xc1c   : > { %v2624_v26 = vadd.f32 %v2620_v13, %v2605_v15  ;;  %v2609_v27 = vadd.f32 %v2608_v25, %v2487_v11 }
 0xc1d   : > { %v2631_v28 = vmul.f32 0.044715, %v2623_v22  ;;  %v2625_v31 = vadd.f32 %v2616_v10, %v2607_v24  ;;  %v2627_v39 = vmul.f32 0.5, %v2623_v22 }
 0xc1e   : > { %v2632_v32 = vmul.f32 0.044715, %v2624_v26  ;;  %v2626_v35 = vadd.f32 %v2620_v13, %v2609_v27  ;;  %v2628_v61 = vmul.f32 0.5, %v2624_v26 }
 0xc1f   : > { %v2635_v36 = vmul.f32 %v2631_v28, %v2623_v22  ;;  %v2633_v37 = vmul.f32 0.044715, %v2625_v31  ;;  %v2629_v59 = vmul.f32 0.5, %v2625_v31 }
 0xc20   : > { %v2636_v63 = vmul.f32 %v2632_v32, %v2624_v26  ;;  %v2634_v40 = vmul.f32 0.044715, %v2626_v35  ;;  %v2630_v33 = vmul.f32 0.5, %v2626_v35 }
 0xc21   : > { %v2639_v41 = vmul.f32 %v2635_v36, %v2623_v22  ;;  %v2637_v43 = vmul.f32 %v2633_v37, %v2625_v31 }
 0xc22   : > { %v2638_v44 = vmul.f32 %v2634_v40, %v2626_v35  ;;  %v2640_v42 = vmul.f32 %v2636_v63, %v2624_v26 }
 0xc23   : > { %v2643_v45 = vadd.f32 %v2639_v41, %v2623_v22  ;;  %v2641_v48 = vmul.f32 %v2637_v43, %v2625_v31 }
 0xc24   : > { %v2642_v49 = vmul.f32 %v2638_v44, %v2626_v35  ;;  %v2644_v50 = vadd.f32 %v2640_v42, %v2624_v26  ;;  %v4617_v44 = vmov 1983009808  }
 0xc25   : > { %v2645_v51 = vadd.f32 %v2641_v48, %v2625_v31  ;;  %v2647_v52 = vmul.f32 0.7978846, %v2643_v45  ;;  %v2950_v42 = vunpack.c.l.s4 %v4617_v44  ;;  %v4618_v48 = vmov 1934713408  }
 0xc26   : > { %v2646_v17 = vadd.f32 %v2642_v49, %v2626_v35  ;;  %v2648_v53 = vmul.f32 0.7978846, %v2644_v50  ;;  %v2981_v49 = vunpack.c.l.s4 %v4618_v48 }
 0xc27   : > { %v2649_v54 = vmul.f32 0.7978846, %v2645_v51  ;;  %4238 = vtanh.f32 %v2647_v52  ;;  %v2951_v45 = vunpack.c.0.s8 %v2950_v42 }
 0xc28   : > { %v2650_v55 = vmul.f32 0.7978846, %v2646_v17  ;;  %4240 = vtanh.f32 %v2648_v53 }
 0xc29   : > { %4242 = vtanh.f32 %v2649_v54  ;;  %v2954_v53 = vsub.s32 %v2951_v45, %v5144_v20 }
 0xc2a   : > { %4244 = vtanh.f32 %v2650_v55 }
 0xc31   : > { %v4239_v56 = vpop.eup %4238 }
 0xc32   : > { %v4241_v57 = vpop.eup %4240  ;;  %v2655_v29 = vadd.f32 1.0, %v4239_v56 }
 0xc33   : > { %v4243_v38 = vpop.eup %4242  ;;  %v2656_v58 = vadd.f32 1.0, %v4241_v57  ;;  %v2982_v57 = vunpack.c.0.s8 %v2981_v49 }
 0xc34   : > { %v4245_v30 = vpop.eup %4244  ;;  %v2657_v60 = vadd.f32 1.0, %v4243_v38  ;;  %v2659_v1 = vmul.f32 %v2655_v29, %v2627_v39 }
 0xc35   : > { %v2658_v62 = vadd.f32 1.0, %v4245_v30  ;;  %v2660_v3 = vmul.f32 %v2656_v58, %v2628_v61 }
 0xc36   : > { %v2661_v2 = vmul.f32 %v2657_v60, %v2629_v59 }
 0xc37   : > { %v2662_v34 = vmul.f32 %v2658_v62, %v2630_v33 }
 0xc38   : > { %v2663_v46 = vpack.c.bf16 %v2661_v2, %v2659_v1  ;;  %v2985_v2 = vsub.s32 %v2982_v57, %v5144_v20 }
 0xc39   : > { %v2664_v47 = vpack.c.bf16 %v2662_v34, %v2660_v3 }
 0xc3b   : > { %2901 = vmatprep.mubr.bf16.mxu1 %v2664_v47 }
 0xc3c   : > { %2902 = vmatmul.mubr.bf16.vlgmr.msra.gmra.mrb[28].mxu1 %v2663_v46 }
 0xd0f   : > { %v2903_v7 = vpop.f32.mrb[28].mxu1 }
 0xd10   : > { %v2904_v8 = vadd.f32 %v2903_v7, %v2702_v5  ;;  %v2905_v9 = vpop.f32.mrb[29].mxu1 }
 0xd11   : > { %v2906_v10 = vadd.f32 %v2905_v9, %v2706_v6  ;;  %v2907_v11 = vpop.f32.mrb[30].mxu1  ;;  %v5322_v9 = vld [vmem:[%s5523_s18] sm:$0x3] }
 0xd12   : > { %v2916_v12 = vmul.f32 0.044715, %v2904_v8  ;;  %v2908_v13 = vadd.f32 %v2907_v11, %v2702_v5  ;;  %v2909_v0 = vpop.f32.mrb[31].mxu1  ;;  %v2912_v52 = vmul.f32 0.5, %v2904_v8 }
 0xd13   : > { %v2917_v14 = vmul.f32 0.044715, %v2906_v10  ;;  %v2910_v15 = vadd.f32 %v2909_v0, %v2706_v6  ;;  %v2913_v55 = vmul.f32 0.5, %v2906_v10 }
 0xd14   : > { %v2920_v16 = vmul.f32 %v2916_v12, %v2904_v8  ;;  %v2918_v22 = vmul.f32 0.044715, %v2908_v13  ;;  %v2914_v58 = vmul.f32 0.5, %v2908_v13 }
 0xd15   : > { %v2921_v24 = vmul.f32 %v2917_v14, %v2906_v10  ;;  %v2919_v25 = vmul.f32 0.044715, %v2910_v15  ;;  %v2915_v59 = vmul.f32 0.5, %v2910_v15 }
 0xd16   : > { %v2924_v26 = vmul.f32 %v2920_v16, %v2904_v8  ;;  %v2922_v27 = vmul.f32 %v2918_v22, %v2908_v13 }
 0xd17   : > { %v2925_v28 = vmul.f32 %v2921_v24, %v2906_v10  ;;  %v2923_v21 = vmul.f32 %v2919_v25, %v2910_v15 }
 0xd18   : > { %v2928_v31 = vadd.f32 %v2924_v26, %v2904_v8  ;;  %v2926_v23 = vmul.f32 %v2922_v27, %v2908_v13 }
 0xd19   : > { %v2929_v32 = vadd.f32 %v2925_v28, %v2906_v10  ;;  %v2927_v35 = vmul.f32 %v2923_v21, %v2910_v15 }
 0xd1a   : > { %v2932_v36 = vmul.f32 0.7978846, %v2928_v31  ;;  %v2930_v37 = vadd.f32 %v2926_v23, %v2908_v13 }
 0xd1b   : > { %v2933_v63 = vmul.f32 0.7978846, %v2929_v32  ;;  %v2931_v40 = vadd.f32 %v2927_v35, %v2910_v15 }
 0xd1c   : > { %4246 = vtanh.f32 %v2932_v36  ;;  %v2934_v41 = vmul.f32 0.7978846, %v2930_v37 }
 0xd1d   : > { %4248 = vtanh.f32 %v2933_v63  ;;  %v2935_v43 = vmul.f32 0.7978846, %v2931_v40 }
 0xd1e   : > { %4250 = vtanh.f32 %v2934_v41 }
 0xd1f   : > { %4252 = vtanh.f32 %v2935_v43 }
 0xd26   : > { %v4247_v50 = vpop.eup %4246 }
 0xd27   : > { %v4249_v51 = vpop.eup %4248  ;;  %v2940_v17 = vadd.f32 1.0, %v4247_v50 }
 0xd28   : > { %v4251_v54 = vpop.eup %4250  ;;  %v2941_v56 = vadd.f32 1.0, %v4249_v51 }
 0xd29   : > { %v4253_v29 = vpop.eup %4252  ;;  %v2944_v38 = vmul.f32 %v2940_v17, %v2912_v52  ;;  %v2942_v30 = vadd.f32 1.0, %v4251_v54 }
 0xd2a   : > { %v2945_v39 = vmul.f32 %v2941_v56, %v2913_v55  ;;  %v2943_v60 = vadd.f32 1.0, %v4253_v29 }
 0xd2b   : > { %v2955_v61 = vrot.slane %v2944_v38, %v2954_v53  ;;  %v2946_v33 = vmul.f32 %v2942_v30, %v2914_v58  ;;  %v2948_v62 = vcombine.high %v2944_v38, %v4615_v18 }
 0xd2c   : > { %v2970_v1 = vrot.slane %v2945_v39, %v2954_v53  ;;  %v2947_v3 = vmul.f32 %v2943_v60, %v2915_v59  ;;  %v2963_v34 = vcombine.high %v2945_v39, %v4615_v18 }
 0xd2d   : > { %v3021_v46 = vrot.slane %v2946_v33, %v2954_v53  ;;  %v2962_v47 = vrot.slane %v2948_v62, %v2954_v53  ;;  %v3014_v4 = vcombine.high %v2946_v33, %v4615_v18 }
 0xd2e   : > { %v2978_v5 = vcombine.low %v2955_v61, %v2970_v1  ;;  %v2979_v6 = vcombine.high %v2955_v61, %v2970_v1  ;;  %v3036_v7 = vrot.slane %v2947_v3, %v2954_v53  ;;  %v2977_v8 = vrot.slane %v2963_v34, %v2954_v53 }
 0xd2f   : > { %v3028_v10 = vrot.slane %v3014_v4, %v2954_v53  ;;  %v3029_v11 = vcombine.high %v2947_v3, %v4615_v18 }
 0xd30   : > { %v2986_v12 = vrot.slane %v2978_v5, %v2985_v2  ;;  %v2993_v13 = vrot.slane %v2979_v6, %v2985_v2  ;;  %v3045_v0 = vcombine.high %v3021_v46, %v3036_v7  ;;  %v3044_v14 = vcombine.low %v3021_v46, %v3036_v7 }
 0xd31   : > { %v2994_v15 = vcombine.low %v2962_v47, %v2977_v8  ;;  %v3043_v16 = vrot.slane %v3029_v11, %v2954_v53  ;;  %v2995_v22 = vcombine.high %v2962_v47, %v2977_v8 }
 0xd32   : > { %v3081_v24 = vmul.f32 %v5322_v9, %v2986_v12  ;;  %v3010_v25 = vcombine.high %v2986_v12, %v4615_v18  ;;  %v3059_v26 = vrot.slane %v3045_v0, %v2985_v2  ;;  %v3052_v27 = vrot.slane %v3044_v14, %v2985_v2 }
 0xd33   : > { %v3060_v28 = vcombine.low %v3028_v10, %v3043_v16  ;;  %v3083_v23 = vmul.f32 %v5322_v9, %v2993_v13  ;;  %v3011_v40 = vcombine.high %v2993_v13, %v4615_v18  ;;  %v3061_v41 = vcombine.high %v3028_v10, %v3043_v16 }
 0xd34   : > { %v3098_v21 = vsel %vm3097_vm2, %v3081_v24, 0.0  ;;  %v3082_v31 = vmul.f32 %v5322_v9, %v3010_v25  ;;  %v3091_v35 = vmul.f32 %v5322_v9, %v3059_v26  ;;  %v3076_v36 = vcombine.high %v3052_v27, %v4615_v18 }
 0xd35   : > { %3099 = vadd.xlane.f32.xlu0 %v3098_v21  ;;  %v3104_v37 = vsel %vm3097_vm2, %v3083_v23, 0.0  ;;  %v3089_v63 = vmul.f32 %v5322_v9, %v3052_v27  ;;  %v3077_v42 = vcombine.high %v3059_v26, %v4615_v18  ;;  %v3084_v48 = vmul.f32 %v5322_v9, %v3011_v40 }
 0xd36   : > { %v3101_v32 = vsel %vm3097_vm2, %v3082_v31, 0.0  ;;  %v3128_v43 = vsel %vm3097_vm2, %v3091_v35, 0.0  ;;  %v3090_v44 = vmul.f32 %v5322_v9, %v3076_v36  ;;  %v3002_v49 = vrot.slane %v2994_v15, %v2985_v2 }
 0xd37   : > { %3102 = vadd.xlane.f32.xlu1 %v3101_v32  ;;  %v3122_v45 = vsel %vm3097_vm2, %v3089_v63, 0.0  ;;  %v3092_v51 = vmul.f32 %v5322_v9, %v3077_v42  ;;  %v3068_v52 = vrot.slane %v3060_v28, %v2985_v2  ;;  %v3107_v17 = vsel %vm3097_vm2, %v3084_v48, 0.0 }
 0xd38   : > { %v3125_v50 = vsel %vm3097_vm2, %v3090_v44, 0.0  ;;  %v3085_v53 = vmul.f32 %v5322_v9, %v3002_v49  ;;  %v3009_v54 = vrot.slane %v2995_v22, %v2985_v2  ;;  %v3075_v57 = vrot.slane %v3061_v41, %v2985_v2 }
 0xd39   : > { %3105 = vadd.xlane.f32.xlu0 %v3104_v37  ;;  %v3131_v55 = vsel %vm3097_vm2, %v3092_v51, 0.0  ;;  %v3093_v56 = vmul.f32 %v5322_v9, %v3068_v52  ;;  %v3012_v58 = vcombine.high %v3002_v49, %v4615_v18  ;;  %v3078_v59 = vcombine.high %v3068_v52, %v4615_v18 }
 0xd3a   : > { %v3110_v29 = vsel %vm3097_vm2, %v3085_v53, 0.0  ;;  %v3087_v38 = vmul.f32 %v5322_v9, %v3009_v54  ;;  %v3095_v39 = vmul.f32 %v5322_v9, %v3075_v57  ;;  %v3013_v33 = vcombine.high %v3009_v54, %v4615_v18 }
 0xd3b   : > { %3129 = vadd.xlane.f32.xlu1 %v3128_v43  ;;  %v3134_v30 = vsel %vm3097_vm2, %v3093_v56, 0.0  ;;  %v3086_v61 = vmul.f32 %v5322_v9, %v3012_v58  ;;  %v3094_v1 = vmul.f32 %v5322_v9, %v3078_v59  ;;  %v3079_v2 = vcombine.high %v3075_v57, %v4615_v18  ;;  %v3712_v18 = vld [vmem:[%s5524_s7] ss:$0 sm:$0xff] }
 0xd3c   : > { %v3116_v60 = vsel %vm3097_vm2, %v3087_v38, 0.0  ;;  %v3140_v62 = vsel %vm3097_vm2, %v3095_v39, 0.0  ;;  %v3088_v34 = vmul.f32 %v5322_v9, %v3013_v33  ;;  %v3237_v51 = vand.u32 127, %v957_v19 }
 0xd3d   : > { %3123 = vadd.xlane.f32.xlu0 %v3122_v45  ;;  %v3113_v3 = vsel %vm3097_vm2, %v3086_v61, 0.0  ;;  %v3137_v46 = vsel %vm3097_vm2, %v3094_v1, 0.0  ;;  %v3096_v47 = vmul.f32 %v5322_v9, %v3079_v2 }
 0xd3e   : > { %v3119_v4 = vsel %vm3097_vm2, %v3088_v34, 0.0  ;;  %v3240_v53 = vsub.s32 %v3237_v51, %v5144_v20 }
 0xd3f   : > { %3126 = vadd.xlane.f32.xlu1 %v3125_v50  ;;  %v3143_v5 = vsel %vm3097_vm2, %v3096_v47, 0.0 }
 0xd41   : > { %3108 = vadd.xlane.f32.xlu0 %v3107_v17 }
 0xd43   : > { %3132 = vadd.xlane.f32.xlu1 %v3131_v55 }
 0xd45   : > { %3111 = vadd.xlane.f32.xlu0 %v3110_v29 }
 0xd47   : > { %3135 = vadd.xlane.f32.xlu1 %v3134_v30 }
 0xd49   : > { %3117 = vadd.xlane.f32.xlu0 %v3116_v60 }
 0xd4b   : > { %3141 = vadd.xlane.f32.xlu1 %v3140_v62 }
 0xd4d   : > { %3114 = vadd.xlane.f32.xlu0 %v3113_v3 }
 0xd4f   : > { %3138 = vadd.xlane.f32.xlu1 %v3137_v46 }
 0xd51   : > { %3120 = vadd.xlane.f32.xlu0 %v3119_v4 }
 0xd53   : > { %3144 = vadd.xlane.f32.xlu1 %v3143_v5 }
 0xd67   : > { %3153 = vbcast.lane.b32.xlu0 %v3712_v18, 256 }
 0xdc2   : > { %v3100_v6 = vpop.xlane.xlu0 %3099 }
 0xdc4   : > { %v3103_v9 = vpop.xlane.xlu1 %3102 }
 0xdc6   : > { %v3106_v7 = vpop.xlane.xlu0 %3105 }
 0xdc8   : > { %v3130_v14 = vpop.xlane.xlu1 %3129 }
 0xdca   : > { %v3124_v8 = vpop.xlane.xlu0 %3123 }
 0xdcc   : > { %v3127_v26 = vpop.xlane.xlu1 %3126 }
 0xdce   : > { %v3109_v10 = vpop.xlane.xlu0 %3108 }
 0xdd0   : > { %v3133_v21 = vpop.xlane.xlu1 %3132 }
 0xdd2   : > { %v3112_v11 = vpop.xlane.xlu0 %3111 }
 0xdd4   : > { %v3136_v36 = vpop.xlane.xlu1 %3135 }
 0xdd6   : > { %v3118_v12 = vpop.xlane.xlu0 %3117 }
 0xdd8   : > { %v3142_v40 = vpop.xlane.xlu1 %3141 }
 0xdda   : > { %v3115_v13 = vpop.xlane.xlu0 %3114 }
 0xddc   : > { %v3139_v44 = vpop.xlane.xlu1 %3138 }
 0xdde   : > { %v3121_v0 = vpop.xlane.xlu0 %3120 }
 0xde0   : > { %v3145_v45 = vpop.xlane.xlu1 %3144 }
 0xde2   : > { %v3154_v15 = vpop.permute.xlu0 %3153 }
 0xde3   : > { %v3159_v16 = vadd.f32 %v3154_v15, %v3109_v10  ;;  %v3156_v22 = vadd.f32 %v3154_v15, %v3100_v6  ;;  %v3160_v24 = vadd.f32 %v3154_v15, %v3112_v11  ;;  %v3158_v25 = vadd.f32 %v3154_v15, %v3106_v7 }
 0xde4   : > { %v3162_v27 = vadd.f32 %v3154_v15, %v3118_v12  ;;  %v3157_v28 = vadd.f32 %v3154_v15, %v3103_v9  ;;  %v3165_v31 = vadd.f32 %v3154_v15, %v3127_v26  ;;  %v3164_v23 = vadd.f32 %v3154_v15, %v3124_v8 }
 0xde5   : > { %3198 = vperm.xlu0 %3986, %v3159_v16   ;;  %3189 = vperm.xlu1 %3985, %v3156_v22   ;;  %v3161_v32 = vadd.f32 %v3154_v15, %v3115_v13  ;;  %v3166_v35 = vadd.f32 %v3154_v15, %v3130_v14  ;;  %v3163_v37 = vadd.f32 %v3154_v15, %v3121_v0 }
 0xde6   : > { %v3167_v63 = vadd.f32 %v3154_v15, %v3133_v21  ;;  %v3168_v41 = vadd.f32 %v3154_v15, %v3136_v36  ;;  %v3170_v43 = vadd.f32 %v3154_v15, %v3142_v40  ;;  %v3169_v42 = vadd.f32 %v3154_v15, %v3139_v44 }
 0xde7   : > { %v3171_v48 = vadd.f32 %v3154_v15, %v3145_v45 }
 0xde9   : > { %3201 = vperm.xlu0 %3986, %v3160_v24   ;;  %3195 = vperm.xlu1 %3985, %v3158_v25  }
 0xded   : > { %3207 = vperm.xlu0 %3986, %v3162_v27   ;;  %3192 = vperm.xlu1 %3985, %v3157_v28  }
 0xdf1   : > { %3216 = vperm.xlu0 %3986, %v3165_v31   ;;  %3213 = vperm.xlu1 %3985, %v3164_v23  }
 0xdf5   : > { %3204 = vperm.xlu0 %3986, %v3161_v32   ;;  %3219 = vperm.xlu1 %3985, %v3166_v35  }
 0xdf9   : > { %3210 = vperm.xlu0 %3986, %v3163_v37   ;;  %3222 = vperm.xlu1 %3985, %v3167_v63  }
 0xdfd   : > { %3225 = vperm.xlu1 %3985, %v3168_v41  }
 0xe01   : > { %3231 = vperm.xlu1 %3985, %v3170_v43  }
 0xe05   : > { %3228 = vperm.xlu1 %3985, %v3169_v42  }
 0xe09   : > { %3234 = vperm.xlu1 %3985, %v3171_v48  }
 0xe64   : > { %v3199_v49 = vpop.permute.xlu0 %3198  ;;  %v3190_v50 = vpop.permute.xlu1 %3189 }
 0xe65   : > { %v3241_v56 = vrot.slane %v3190_v50, %v3240_v53  ;;  %v3253_v19 = vrot.slane %v3199_v49, %v3240_v53 }
 0xe68   : > { %v3202_v52 = vpop.permute.xlu0 %3201  ;;  %v3196_v17 = vpop.permute.xlu1 %3195 }
 0xe69   : > { %v3249_v29 = vrot.slane %v3196_v17, %v3240_v53  ;;  %v3257_v20 = vrot.slane %v3202_v52, %v3240_v53 }
 0xe6c   : > { %v3208_v54 = vpop.permute.xlu0 %3207  ;;  %v3193_v55 = vpop.permute.xlu1 %3192 }
 0xe6d   : > { %v3245_v57 = vrot.slane %v3193_v55, %v3240_v53  ;;  %v3265_v2 = vrot.slane %v3208_v54, %v3240_v53 }
 0xe6f   : > { %v3303_v38 = vsel %vm3302_vm3, %v3245_v57, %v3241_v56 }
 0xe70   : > { %v3305_v58 = vsel %vm3304_vm4, %v3249_v29, %v3303_v38  ;;  %v3217_v30 = vpop.permute.xlu0 %3216  ;;  %v3214_v39 = vpop.permute.xlu1 %3213 }
 0xe71   : > { %v3307_v59 = vsel %vm3306_vm5, %v3253_v19, %v3305_v58  ;;  %v3277_v18 = vrot.slane %v3217_v30, %v3240_v53  ;;  %v3273_v6 = vrot.slane %v3214_v39, %v3240_v53 }
 0xe72   : > { %v3309_v62 = vsel %vm3308_vm6, %v3257_v20, %v3307_v59 }
 0xe73   : > { %v3316_v12 = vsel %vm3302_vm3, %v3277_v18, %v3273_v6 }
 0xe74   : > { %v3205_v60 = vpop.permute.xlu0 %3204  ;;  %v3220_v61 = vpop.permute.xlu1 %3219 }
 0xe75   : > { %v3261_v33 = vrot.slane %v3205_v60, %v3240_v53  ;;  %v3281_v7 = vrot.slane %v3220_v61, %v3240_v53 }
 0xe77   : > { %v3311_v1 = vsel %vm3310_vm7, %v3261_v33, %v3309_v62  ;;  %v3317_v13 = vsel %vm3304_vm4, %v3281_v7, %v3316_v12 }
 0xe78   : > { %v3211_v3 = vpop.permute.xlu0 %3210  ;;  %v3223_v34 = vpop.permute.xlu1 %3222  ;;  %v3313_v47 = vsel %vm3312_vm8, %v3265_v2, %v3311_v1 }
 0xe79   : > { %v3269_v46 = vrot.slane %v3211_v3, %v3240_v53  ;;  %v3285_v10 = vrot.slane %v3223_v34, %v3240_v53 }
 0xe7b   : > { %v3315_v4 = vsel %vm3314_vm9, %v3269_v46, %v3313_v47  ;;  %v3318_v0 = vsel %vm3306_vm5, %v3285_v10, %v3317_v13 }
 0xe7c   : > { %3326 = vst.msk [vmem:[%s917_s3] sm:$0xff] %vm3325_vm10, %v3315_v4  ;;  %v3226_v5 = vpop.permute.xlu1 %3225 }
 0xe7d   : > { %v3289_v11 = vrot.slane %v3226_v5, %v3240_v53 }
 0xe7f   : > { %v3319_v15 = vsel %vm3308_vm6, %v3289_v11, %v3318_v0 }
 0xe80   : > { %v3232_v8 = vpop.permute.xlu1 %3231 }
 0xe81   : > { %v3297_v22 = vrot.slane %v3232_v8, %v3240_v53 }
 0xe84   : > { %v3229_v9 = vpop.permute.xlu1 %3228 }
 0xe85   : > { %v3293_v14 = vrot.slane %v3229_v9, %v3240_v53 }
 0xe87   : > { %v3320_v16 = vsel %vm3310_vm7, %v3293_v14, %v3319_v15 }
 0xe88   : > { %v3235_v24 = vpop.permute.xlu1 %3234  ;;  %v3321_v26 = vsel %vm3312_vm8, %v3297_v22, %v3320_v16 }
 0xe89   : > { %v3301_v25 = vrot.slane %v3235_v24, %v3240_v53 }
 0xe8b   : > { %v3322_v27 = vsel %vm3314_vm9, %v3301_v25, %v3321_v26 }
 0xe8c   : > { %3327 = vst.msk [vmem:[%s917_s3 + $0x8] sm:$0xff] %vm3325_vm10, %v3322_v27 }
 0xe8d PF: > { %s5526_s25 = sld [smem:[#allocation25_spill]]  ;;  %s5527_s26 = sld [smem:[#allocation24_spill]] }
 0xe8e   : > { %s5528_s24 = sld [smem:[#allocation26_spill]]  ;;  %s5529_s4 = smov %s4586_s30 }
 0xe93   : > { %p40_p12 = scmp.ge.s32.totalorder %s5526_s25, 4   ;;  %s5530_s30 = smov %s5527_s26 }
 0xe95   :  { %42 = sbr.rel (!%p40_p12) target bundleno = 30 (0x1e), region = 207 }
 0xe9c   :  { %3349 = vsyncpa [#allocation3], 1 }
 0xe9d   :  { %3351 = vsyncpa [#allocation3 + $0x1], 1 }
 0xe9e   :  { %3352 = vsyncpa [#allocation5], 1 }
 0xe9f   :  { %3354 = vsyncpa [#allocation5 + $0x1], 1 }
 0xea0   :  { %3355 = vsyncpa [#allocation8], 1 }
 0xea1   :  { %3356 = vsyncpa [#allocation11], 1 }
 0xea2   :  { %3357 = vsyncpa [#allocation14], 1 }
 0xea3   :  { %3358 = vsyncpa [#allocation17], 1 }

</bundles_post_ra>
